<compile_context>
chip_gen: v6e
topology: v6e:2x2x1
jax: 0.10.0
libtpu: 0.0.40
codegen_flags: <defaults>
</compile_context>

<pallas_src>
import functools
import math

import jax
import jax.numpy as jnp
from jax.experimental import pallas as pl
from jax.experimental.pallas import tpu as pltpu

LANE = 128                       # TPU lane width; feature dims padded to this
_MXU_DTYPE = jnp.bfloat16        # matmul operand dtype (f32 accumulation)


# ----------------------------- small helpers -------------------------------
def _pad_dim(n):
    return ((n + LANE - 1) // LANE) * LANE


def _pad_rows(n, m=8):
    return ((n + m - 1) // m) * m


def _pad_to(a, shape, dtype=jnp.float32):
    out = jnp.zeros(shape, jnp.float32)
    sl = tuple(slice(0, s) for s in a.shape)
    return out.at[sl].set(a.astype(jnp.float32)).astype(dtype)


def _fs(shape):
    nd = len(shape)
    return pl.BlockSpec(shape, lambda i, _nd=nd: (0,) * _nd)


def _gelu(x):
    # TODO(synk): HF BERT uses exact erf-based GELU; tanh approximation used here.
    return 0.5 * x * (1.0 + jnp.tanh(0.7978845608028654 * (x + 0.044715 * x * x * x)))


def _masked_layernorm(x, g, b, valid, inv_n, eps=1e-12):
    """LayerNorm over the first true_n lanes; `valid`/`inv_n` are hoisted by caller."""
    mu = jnp.sum(x, axis=-1, keepdims=True) * inv_n          # padded lanes are 0
    d = (x - mu) * valid
    var = jnp.sum(d * d, axis=-1, keepdims=True) * inv_n
    return (x - mu) * jax.lax.rsqrt(var + eps) * g + b       # padded g/b are 0 -> output 0


# ----------------------------- per-layer streamed BERT kernel --------------
def _bert_layer_kernel(x_ref, mask_ref,
                       wqkv_ref, bqkv_ref, wo_ref, bo_ref,
                       ln1g_ref, ln1b_ref, wi_ref, bi_ref,
                       wo2_ref, bo2_ref, ln2g_ref, ln2b_ref,
                       preg_ref, preb_ref, o_ref, xs_ref, *,
                       num_heads, head_dim, true_h, apply_pre_ln, bblk, seq):
    l = pl.program_id(1)
    hp = x_ref.shape[-1]
    bs = bblk * seq
    scale = 1.0 / math.sqrt(head_dim)

    # Hoisted lane masks (once per grid step, not per LayerNorm / per head use).
    lane2 = jax.lax.broadcasted_iota(jnp.int32, (1, hp), 1)
    valid = (lane2 < true_h).astype(jnp.float32)
    inv_n = 1.0 / float(true_h)
    lane3 = jax.lax.broadcasted_iota(jnp.int32, (1, 1, hp), 2)
    head_masks = [((lane3 >= h * head_dim) & (lane3 < (h + 1) * head_dim)).astype(jnp.float32)
                  for h in range(num_heads)]

    @pl.when(l == 0)
    def _():
        x0 = x_ref[...].reshape(bs, hp)                    # sublane-contiguous (seq%8==0)
        if apply_pre_ln:                                   # BERT embedding LayerNorm
            x0 = _masked_layernorm(x0, preg_ref[...], preb_ref[...], valid, inv_n)
        xs_ref[...] = x0

    x = xs_ref[...]                                        # [bs, hp] carried activation
    amask = mask_ref[...]                                  # [bblk, 1, seq] additive mask

    # Fused QKV projection (bf16 weights, f32 accumulation): [bs,hp] @ [hp,3hp]
    qkv = jnp.dot(x.astype(_MXU_DTYPE), wqkv_ref[0],
                  preferred_element_type=jnp.float32) + bqkv_ref[0]
    q3 = qkv[:, 0:hp].reshape(bblk, seq, hp)
    k3 = qkv[:, hp:2 * hp].reshape(bblk, seq, hp).astype(_MXU_DTYPE)
    v3 = qkv[:, 2 * hp:3 * hp].reshape(bblk, seq, hp)

    # Per-head attention with heads packed densely inside the 128-lane slot.
    # TODO(synk): for real BERT sizes (HP>128) slice per 128-lane slot first and
    # mask within the slot; at long sequence lengths switch to a kv-tiled
    # flash-attention loop (full S x S score tile fits VMEM at S<=8).
    ctx3 = None
    for h in range(num_heads):
        qh = (q3 * head_masks[h]).astype(_MXU_DTYPE)       # masking q suffices for Q.K^T
        s = jnp.einsum('bqd,bkd->bqk', qh, k3,
                       preferred_element_type=jnp.float32) * scale
        s = s + amask
        s = s - jnp.max(s, axis=-1, keepdims=True)
        p = jnp.exp(s)
        p = p * pl.reciprocal(jnp.sum(p, axis=-1, keepdims=True), approx=True)
        vh = (v3 * head_masks[h]).astype(_MXU_DTYPE)
        term = jnp.einsum('bqk,bkd->bqd', p.astype(_MXU_DTYPE), vh,
                          preferred_element_type=jnp.float32)
        ctx3 = term if ctx3 is None else ctx3 + term       # head lanes are disjoint

    # Single fused output projection (one MXU issue per layer) + bias.
    attn = jnp.dot(ctx3.reshape(bs, hp).astype(_MXU_DTYPE), wo_ref[0],
                   preferred_element_type=jnp.float32) + bo_ref[0]

    h1 = _masked_layernorm(attn + x, ln1g_ref[0], ln1b_ref[0], valid, inv_n)
    inter = _gelu(jnp.dot(h1.astype(_MXU_DTYPE), wi_ref[0],
                          preferred_element_type=jnp.float32) + bi_ref[0])
    ff = jnp.dot(inter.astype(_MXU_DTYPE), wo2_ref[0],
                 preferred_element_type=jnp.float32) + bo2_ref[0]
    xn = _masked_layernorm(ff + h1, ln2g_ref[0], ln2b_ref[0], valid, inv_n)
    xs_ref[...] = xn

    @pl.when(l == pl.num_programs(1) - 1)
    def _():
        # Only the CLS row is ever consumed -> write back [bblk, 1, hp] only.
        o_ref[...] = xn.reshape(bblk, seq, hp)[:, 0:1, :]


def bert_stack(x, add_mask, sp, num_heads, pre_ln=None):
    """Run a streamed stack of BERT layers. x: [B, S, HP] zero-padded, add_mask: [B,1,S].
    Returns the CLS representation [B, HP]."""
    B, S, HP = x.shape
    assert S % 8 == 0, "sequence length must be sublane-padded (multiple of 8)"
    L = sp["wqkv"].shape[0]
    true_h = sp["true_h"]
    head_dim = true_h // num_heads
    nb = 2 if (B % 2 == 0 and B >= 2) else 1   # 2 blocks -> v7x megacore sharding
    bblk = B // nb

    if pre_ln is None:
        pre_g = jnp.zeros((1, HP), jnp.float32)
        pre_b = jnp.zeros((1, HP), jnp.float32)
        apply_pre_ln = False
    else:
        pre_g, pre_b = pre_ln
        apply_pre_ln = True

    kernel = functools.partial(
        _bert_layer_kernel, num_heads=num_heads, head_dim=head_dim,
        true_h=true_h, apply_pre_ln=apply_pre_ln, bblk=bblk, seq=S)

    param_order = ["wqkv", "bqkv", "wo", "bo", "ln1g", "ln1b",
                   "wi", "bi", "wo2", "bo2", "ln2g", "ln2b"]
    params = [sp[k] for k in param_order]

    def layer_spec(arr):
        nd = len(arr.shape)
        return pl.BlockSpec((1,) + arr.shape[1:],
                            lambda b, l, _nd=nd: (l,) + (0,) * (_nd - 1))

    in_specs = ([pl.BlockSpec((bblk, S, HP), lambda b, l: (b, 0, 0)),
                 pl.BlockSpec((bblk, 1, S), lambda b, l: (b, 0, 0))]
                + [layer_spec(p) for p in params]
                + [pl.BlockSpec((1, HP), lambda b, l: (0, 0)),
                   pl.BlockSpec((1, HP), lambda b, l: (0, 0))])

    # Explicit scoped-VMEM budget: double-buffered per-layer weights + activations.
    per_layer_bytes = sum((p.size // L) * p.dtype.itemsize for p in params)
    act_bytes = bblk * S * HP * 4
    need = 2 * per_layer_bytes + 4 * act_bytes + (4 << 20)
    vmem_limit = int(min(max(need, 32 << 20), 100 << 20))

    out = pl.pallas_call(
        kernel,
        out_shape=jax.ShapeDtypeStruct((B, 1, HP), jnp.float32),
        grid=(nb, L),
        in_specs=in_specs,
        out_specs=pl.BlockSpec((bblk, 1, HP), lambda b, l: (b, 0, 0)),
        scratch_shapes=[pltpu.VMEM((bblk * S, HP), jnp.float32)],
        compiler_params=pltpu.CompilerParams(
            dimension_semantics=("parallel", "arbitrary"),
            vmem_limit_bytes=vmem_limit),
    )(x, add_mask, *params, pre_g, pre_b)
    return out[:, 0, :]


# ----------------------------- head: f_dense + cosine + MSE ----------------
def _head_kernel(cls_ref, fw_ref, s_ref, pred_ref, sq_ref, loss_ref, *, p):
    g = jnp.dot(cls_ref[...], fw_ref[...], preferred_element_type=jnp.float32)  # [2p, OUT]
    lg = g[0:p, :]
    rg = g[p:2 * p, :]
    dot = jnp.sum(lg * rg, axis=-1, keepdims=True)
    ln = jnp.sqrt(jnp.sum(lg * lg, axis=-1, keepdims=True))
    rn = jnp.sqrt(jnp.sum(rg * rg, axis=-1, keepdims=True))
    eps = 1e-8
    denom = jnp.maximum(ln, eps) * jnp.maximum(rn, eps)   # torch clamps each norm separately
    cos = dot / denom                                     # exact division (loss-path parity)
    pred_ref[...] = cos
    sq = jnp.square(cos - s_ref[...])
    sq_ref[...] = sq
    loss_ref[...] = jnp.mean(sq, keepdims=True)           # nn.MSELoss (mean)


def head_cosine_mse(l_cls, r_cls, f_dense_w, scores):
    p = l_cls.shape[0]
    cat = jnp.concatenate([l_cls, r_cls], axis=0)         # one f_dense matmul for both sides
    return pl.pallas_call(
        functools.partial(_head_kernel, p=p),
        out_shape=(jax.ShapeDtypeStruct((p, 1), jnp.float32),
                   jax.ShapeDtypeStruct((p, 1), jnp.float32),
                   jax.ShapeDtypeStruct((1, 1), jnp.float32)),
        grid=(1,),
        in_specs=[_fs(cat.shape), _fs(f_dense_w.shape), _fs(scores.shape)],
        out_specs=(_fs((p, 1)), _fs((p, 1)), _fs((1, 1))),
    )(cat, f_dense_w, scores)


def _f_dense_kernel(x_ref, w_ref, o_ref):
    o_ref[...] = jnp.dot(x_ref[...], w_ref[...], preferred_element_type=jnp.float32)


def f_dense_apply(x, w):
    m, n = x.shape[0], w.shape[1]
    return pl.pallas_call(
        _f_dense_kernel,
        out_shape=jax.ShapeDtypeStruct((m, n), jnp.float32),
        grid=(1,),
        in_specs=[_fs(x.shape), _fs(w.shape)],
        out_specs=_fs((m, n)),
    )(x, w)


# ----------------------------- model forward --------------------------------
def text_encoder(params, token_ids, mask_ids, token_type_ids, num_heads):
    b, s = token_ids.shape
    emb = (jnp.take(params["word_emb"], token_ids, axis=0)
           + params["pos_emb"][None, :s, :]
           + jnp.take(params["type_emb"], token_type_ids, axis=0))        # [b, s, HP]
    add_mask = ((1.0 - mask_ids.astype(jnp.float32)) * -10000.0)[:, None, :]
    return bert_stack(emb, add_mask, params["stack"], num_heads,
                      pre_ln=(params["emb_ln_g"], params["emb_ln_b"]))    # [b, HP] CLS


def graph_encoder_cls(params, all_subgraph, node_text_vec, node_type_ids, node_gate, num_heads):
    n_nodes, hp = node_text_vec.shape
    # Node gating is purely elementwise -> plain XLA (no kernel launch overhead).
    meta_vec = jnp.take(params["meta_emb"], node_type_ids, axis=0)
    lm = jnp.sum(meta_vec * params["meta_w"], axis=-1, keepdims=True) + params["meta_b"]
    lt = jnp.sum(node_text_vec * params["text_w"], axis=-1, keepdims=True) + params["text_b"]
    attn = jax.nn.softmax(jnp.concatenate([lm, lt], axis=-1), axis=-1)
    node_emb = (meta_vec * attn[:, 0:1] + node_text_vec * attn[:, 1:2]) * node_gate[:, None]

    # Pad the subgraph length to a sublane multiple using pad-index entries; the
    # additive attention mask makes the extra positions numerically inert.
    g, gs = all_subgraph.shape
    gs_pad = _pad_rows(gs, 8)
    if gs_pad != gs:
        pad = jnp.full((g, gs_pad - gs), n_nodes, all_subgraph.dtype)
        all_subgraph = jnp.concatenate([all_subgraph, pad], axis=1)
    mask = (all_subgraph != n_nodes).astype(jnp.float32)
    add_mask = ((1.0 - mask) * -10000.0)[:, None, :]
    node_emb_pad = jnp.concatenate([node_emb, jnp.zeros((1, hp), jnp.float32)], axis=0)
    x = jnp.take(node_emb_pad, all_subgraph, axis=0)         # F.embedding gather
    return bert_stack(x, add_mask, params["stack"], num_heads, pre_ln=None)  # graph CLS


def bert_gat_forward(params, token_ids, mask_ids, token_type_ids, node_type_ids,
                     node_vectors, all_subgraph, all_adj_matrix, scores,
                     is_training=True, is_inference=False, num_heads=2):
    # NOTE: all_adj_matrix is unused in the PyTorch forward as well.
    node_text_vec = text_encoder(params["text"], token_ids, mask_ids,
                                 token_type_ids, num_heads)
    graph_cls = graph_encoder_cls(params["graph"], all_subgraph, node_text_vec,
                                  node_type_ids, node_vectors[:, -1], num_heads)
    if is_inference:
        return f_dense_apply(graph_cls, params["graph"]["f_dense_w"])
    l_cls = graph_cls[0::2, :]
    r_cls = graph_cls[1::2, :]
    preds, sq_err, loss = head_cosine_mse(l_cls, r_cls,
                                          params["graph"]["f_dense_w"], scores[:, None])
    if is_training:
        return loss[0, 0], sq_err[:, 0], preds[:, 0]
    return sq_err[:, 0]


# ----------------------------- parameter construction ----------------------
def make_layer_params(key, h, inter):
    ks = jax.random.split(key, 6)

    def w(k, din, dout, std=0.02):
        return jax.random.normal(k, (din, dout), jnp.float32) * std

    return {
        "wq": w(ks[0], h, h), "bq": jnp.zeros((1, h), jnp.float32),
        "wk": w(ks[1], h, h), "bk": jnp.zeros((1, h), jnp.float32),
        "wv": w(ks[2], h, h), "bv": jnp.zeros((1, h), jnp.float32),
        "wo": w(ks[3], h, h), "bo": jnp.zeros((1, h), jnp.float32),
        "ln1_g": jnp.ones((1, h), jnp.float32), "ln1_b": jnp.zeros((1, h), jnp.float32),
        "wi": w(ks[4], h, inter), "bi": jnp.zeros((1, inter), jnp.float32),
        "wo2": w(ks[5], inter, h), "bo2": jnp.zeros((1, h), jnp.float32),
        "ln2_g": jnp.ones((1, h), jnp.float32), "ln2_b": jnp.zeros((1, h), jnp.float32),
    }


def build_stack_params(layer_dicts, h, num_heads, inter):
    """Stack per-layer params. Matmul weights bf16, heads packed densely (no 128-per-head pad)."""
    hp, ip = _pad_dim(h), _pad_dim(inter)
    wdt = _MXU_DTYPE

    def fuse_qkv_w(ld):
        return jnp.concatenate([_pad_to(ld[n], (hp, hp), wdt)
                                for n in ("wq", "wk", "wv")], axis=1)     # [hp, 3*hp]

    def fuse_qkv_b(ld):
        return jnp.concatenate([_pad_to(ld[n], (1, hp))
                                for n in ("bq", "bk", "bv")], axis=1)     # [1, 3*hp]

    return {
        "wqkv": jnp.stack([fuse_qkv_w(ld) for ld in layer_dicts]),
        "bqkv": jnp.stack([fuse_qkv_b(ld) for ld in layer_dicts]),
        "wo":   jnp.stack([_pad_to(ld["wo"], (hp, hp), wdt) for ld in layer_dicts]),
        "bo":   jnp.stack([_pad_to(ld["bo"], (1, hp)) for ld in layer_dicts]),
        "ln1g": jnp.stack([_pad_to(ld["ln1_g"], (1, hp)) for ld in layer_dicts]),
        "ln1b": jnp.stack([_pad_to(ld["ln1_b"], (1, hp)) for ld in layer_dicts]),
        "wi":   jnp.stack([_pad_to(ld["wi"], (hp, ip), wdt) for ld in layer_dicts]),
        "bi":   jnp.stack([_pad_to(ld["bi"], (1, ip)) for ld in layer_dicts]),
        "wo2":  jnp.stack([_pad_to(ld["wo2"], (ip, hp), wdt) for ld in layer_dicts]),
        "bo2":  jnp.stack([_pad_to(ld["bo2"], (1, hp)) for ld in layer_dicts]),
        "ln2g": jnp.stack([_pad_to(ld["ln2_g"], (1, hp)) for ld in layer_dicts]),
        "ln2b": jnp.stack([_pad_to(ld["ln2_b"], (1, hp)) for ld in layer_dicts]),
        "true_h": h,
    }


if __name__ == "__main__":
    key = jax.random.PRNGKey(0)
    H, NH, INTER = 32, 2, 64           # synthetic small BERT hidden size / heads / FFN
    VOCAB, MAX_POS, N_TYPES = 50, 16, 4
    N_NODES, SEQ = 6, 8                # node texts and their token length
    N_GRAPHS, GSEQ = 4, 5              # subgraphs (2 pairs) and nodes per subgraph
    OUT_DIM = 768                      # f_dense projection dim (as in the module)
    HP = _pad_dim(H)                   # 128-lane padded hidden

    keys = jax.random.split(key, 20)

    # text encoder (synthetic BertModel: embeddings + 2 layers)
    # TODO(synk): real module loads pretrained HF BERT weights; synthetic init here.
    text_layers = [make_layer_params(keys[3], H, INTER),
                   make_layer_params(keys[4], H, INTER)]
    text_params = {
        "word_emb": _pad_to(jax.random.normal(keys[0], (VOCAB, H)) * 0.02, (VOCAB, HP)),
        "pos_emb": _pad_to(jax.random.normal(keys[1], (MAX_POS, H)) * 0.02, (MAX_POS, HP)),
        "type_emb": _pad_to(jax.random.normal(keys[2], (2, H)) * 0.02, (2, HP)),
        "emb_ln_g": _pad_to(jnp.ones((1, H), jnp.float32), (1, HP)),
        "emb_ln_b": jnp.zeros((1, HP), jnp.float32),
        "stack": build_stack_params(text_layers, H, NH, INTER),
    }

    # graph encoder: meta embedding (+ zero pad row), gating heads (std=1, zero bias
    # per init_weights), f_dense (std=1, no bias), last-3 BERT layers.
    embed_matrix = jax.random.normal(keys[5], (N_TYPES, H), jnp.float32)
    graph_layers = [make_layer_params(keys[9], H, INTER),
                    make_layer_params(keys[10], H, INTER),
                    make_layer_params(keys[11], H, INTER)]
    graph_params = {
        "meta_emb": _pad_to(jnp.concatenate([embed_matrix, jnp.zeros((1, H), jnp.float32)],
                                            axis=0), (N_TYPES + 1, HP)),
        "meta_w": _pad_to(jax.random.normal(keys[6], (1, H)), (1, HP)),
        "meta_b": jnp.zeros((1, 1), jnp.float32),
        "text_w": _pad_to(jax.random.normal(keys[7], (1, H)), (1, HP)),
        "text_b": jnp.zeros((1, 1), jnp.float32),
        "f_dense_w": _pad_to(jax.random.normal(keys[8], (H, OUT_DIM)), (HP, OUT_DIM)),
        "stack": build_stack_params(graph_layers, H, NH, INTER),
    }
    params = {"text": text_params, "graph": graph_params}

    token_ids = jax.random.randint(keys[12], (N_NODES, SEQ), 0, VOCAB)
    mask_ids = jnp.ones((N_NODES, SEQ), jnp.int32)
    token_type_ids = jnp.zeros((N_NODES, SEQ), jnp.int32)
    node_type_ids = jax.random.randint(keys[13], (N_NODES,), 0, N_TYPES)
    node_vectors = jax.random.uniform(keys[14], (N_NODES, 3), jnp.float32)
    all_subgraph = jax.random.randint(keys[15], (N_GRAPHS, GSEQ), 0, N_NODES + 1)  # N_NODES = pad idx
    all_adj_matrix = jnp.ones((N_GRAPHS, GSEQ, GSEQ), jnp.float32)                 # unused
    scores = jax.random.uniform(keys[16], (N_GRAPHS // 2,), jnp.float32)

    loss, sq_err, preds = bert_gat_forward(params, token_ids, mask_ids, token_type_ids,
                                           node_type_ids, node_vectors, all_subgraph,
                                           all_adj_matrix, scores, is_training=True)
    jax.block_until_ready((loss, sq_err, preds))
    print("KERNEL_OK")
</pallas_src>

<mosaic_0001>
module attributes {stable_mosaic.version = 11 : i64} {
  func.func @_bert_layer_kernel(%arg0: i32, %arg1: i32, %arg2: memref<3x8x128xf32, #tpu.memory_space<vmem>>, %arg3: memref<3x1x8xf32, #tpu.memory_space<vmem>>, %arg4: memref<1x128x384xbf16, #tpu.memory_space<vmem>>, %arg5: memref<1x1x384xf32, #tpu.memory_space<vmem>>, %arg6: memref<1x128x128xbf16, #tpu.memory_space<vmem>>, %arg7: memref<1x1x128xf32, #tpu.memory_space<vmem>>, %arg8: memref<1x1x128xf32, #tpu.memory_space<vmem>>, %arg9: memref<1x1x128xf32, #tpu.memory_space<vmem>>, %arg10: memref<1x128x128xbf16, #tpu.memory_space<vmem>>, %arg11: memref<1x1x128xf32, #tpu.memory_space<vmem>>, %arg12: memref<1x128x128xbf16, #tpu.memory_space<vmem>>, %arg13: memref<1x1x128xf32, #tpu.memory_space<vmem>>, %arg14: memref<1x1x128xf32, #tpu.memory_space<vmem>>, %arg15: memref<1x1x128xf32, #tpu.memory_space<vmem>>, %arg16: memref<1x128xf32, #tpu.memory_space<vmem>>, %arg17: memref<1x128xf32, #tpu.memory_space<vmem>>, %arg18: memref<3x1x128xf32, #tpu.memory_space<vmem>>, %arg19: memref<24x128xf32, #tpu.memory_space<vmem>>) attributes {dimension_semantics = [#tpu.dimension_semantics<parallel>, #tpu.dimension_semantics<arbitrary>], iteration_bounds = array<i64: 2, 2>, scalar_prefetch = 0 : i64, scratch_operands = 1 : i64, tpu.core_type = #tpu.core_type<tc>, window_params = [{transform_indices = @transform_0, window_bounds = array<i64: 3, 8, 128>}, {transform_indices = @transform_1, window_bounds = array<i64: 3, 1, 8>}, {transform_indices = @transform_2, window_bounds = array<i64: 1, 128, 384>}, {transform_indices = @transform_3, window_bounds = array<i64: 1, 1, 384>}, {transform_indices = @transform_4, window_bounds = array<i64: 1, 128, 128>}, {transform_indices = @transform_5, window_bounds = array<i64: 1, 1, 128>}, {transform_indices = @transform_6, window_bounds = array<i64: 1, 1, 128>}, {transform_indices = @transform_7, window_bounds = array<i64: 1, 1, 128>}, {transform_indices = @transform_8, window_bounds = array<i64: 1, 128, 128>}, {transform_indices = @transform_9, window_bounds = array<i64: 1, 1, 128>}, {transform_indices = @transform_10, window_bounds = array<i64: 1, 128, 128>}, {transform_indices = @transform_11, window_bounds = array<i64: 1, 1, 128>}, {transform_indices = @transform_12, window_bounds = array<i64: 1, 1, 128>}, {transform_indices = @transform_13, window_bounds = array<i64: 1, 1, 128>}, {pipeline_mode = #tpu.pipeline_mode<synchronous>, transform_indices = @transform_14, window_bounds = array<i64: 1, 128>}, {pipeline_mode = #tpu.pipeline_mode<synchronous>, transform_indices = @transform_15, window_bounds = array<i64: 1, 128>}, {transform_indices = @transform_16, window_bounds = array<i64: 3, 1, 128>}]} {
    %0 = tpu.iota {dimensions = array<i32: 1>} : vector<1x128xi32>
    %c32_i32 = arith.constant 32 : i32
    %1 = vector.broadcast %c32_i32 : i32 to vector<1x128xi32>
    %2 = arith.cmpi slt, %0, %1 : vector<1x128xi32>
    %3 = arith.extui %2 : vector<1x128xi1> to vector<1x128xi32>
    %4 = arith.sitofp %3 : vector<1x128xi32> to vector<1x128xf32>
    %5 = tpu.iota {dimensions = array<i32: 2>} : vector<1x1x128xi32>
    %c0_i32 = arith.constant 0 : i32
    %6 = vector.broadcast %c0_i32 : i32 to vector<1x1x128xi32>
    %7 = arith.cmpi sge, %5, %6 : vector<1x1x128xi32>
    %c16_i32 = arith.constant 16 : i32
    %8 = vector.broadcast %c16_i32 : i32 to vector<1x1x128xi32>
    %9 = arith.cmpi slt, %5, %8 : vector<1x1x128xi32>
    %10 = arith.andi %7, %9 : vector<1x1x128xi1>
    %11 = arith.extui %10 : vector<1x1x128xi1> to vector<1x1x128xi32>
    %12 = arith.sitofp %11 : vector<1x1x128xi32> to vector<1x1x128xf32>
    %c16_i32_0 = arith.constant 16 : i32
    %13 = vector.broadcast %c16_i32_0 : i32 to vector<1x1x128xi32>
    %14 = arith.cmpi sge, %5, %13 : vector<1x1x128xi32>
    %c32_i32_1 = arith.constant 32 : i32
    %15 = vector.broadcast %c32_i32_1 : i32 to vector<1x1x128xi32>
    %16 = arith.cmpi slt, %5, %15 : vector<1x1x128xi32>
    %17 = arith.andi %14, %16 : vector<1x1x128xi1>
    %18 = arith.extui %17 : vector<1x1x128xi1> to vector<1x1x128xi32>
    %19 = arith.sitofp %18 : vector<1x1x128xi32> to vector<1x1x128xf32>
    %c0_i32_2 = arith.constant 0 : i32
    %20 = arith.cmpi eq, %arg1, %c0_i32_2 : i32
    %21 = arith.extui %20 : i1 to i32
    %c0_i32_3 = arith.constant 0 : i32
    %22 = arith.cmpi ne, %21, %c0_i32_3 : i32
    scf.if %22 {
      %c0_74 = arith.constant 0 : index
      %c0_75 = arith.constant 0 : index
      %c0_76 = arith.constant 0 : index
      %187 = vector.load %arg2[%c0_74, %c0_75, %c0_76] : memref<3x8x128xf32, #tpu.memory_space<vmem>>, vector<3x8x128xf32>
      %188 = vector.shape_cast %187 : vector<3x8x128xf32> to vector<24x128xf32>
      %c0_77 = arith.constant 0 : index
      %c0_78 = arith.constant 0 : index
      %189 = vector.load %arg16[%c0_77, %c0_78] : memref<1x128xf32, #tpu.memory_space<vmem>>, vector<1x128xf32>
      %c0_79 = arith.constant 0 : index
      %c0_80 = arith.constant 0 : index
      %190 = vector.load %arg17[%c0_79, %c0_80] : memref<1x128xf32, #tpu.memory_space<vmem>>, vector<1x128xf32>
      %cst_81 = arith.constant dense<0.000000e+00> : vector<24xf32>
      %191 = vector.multi_reduction <add>, %188, %cst_81 [1] : vector<24x128xf32> to vector<24xf32>
      %192 = vector.shape_cast %191 : vector<24xf32> to vector<24x1xf32>
      %cst_82 = arith.constant 3.125000e-02 : f32
      %193 = vector.broadcast %cst_82 : f32 to vector<24x1xf32>
      %194 = arith.mulf %192, %193 : vector<24x1xf32>
      %195 = vector.broadcast %194 : vector<24x1xf32> to vector<24x128xf32>
      %196 = arith.subf %188, %195 : vector<24x128xf32>
      %197 = vector.broadcast %4 : vector<1x128xf32> to vector<24x128xf32>
      %198 = arith.mulf %196, %197 : vector<24x128xf32>
      %199 = arith.mulf %198, %198 : vector<24x128xf32>
      %cst_83 = arith.constant dense<0.000000e+00> : vector<24xf32>
      %200 = vector.multi_reduction <add>, %199, %cst_83 [1] : vector<24x128xf32> to vector<24xf32>
      %201 = vector.shape_cast %200 : vector<24xf32> to vector<24x1xf32>
      %cst_84 = arith.constant 3.125000e-02 : f32
      %202 = vector.broadcast %cst_84 : f32 to vector<24x1xf32>
      %203 = arith.mulf %201, %202 : vector<24x1xf32>
      %204 = vector.broadcast %194 : vector<24x1xf32> to vector<24x128xf32>
      %205 = arith.subf %188, %204 : vector<24x128xf32>
      %cst_85 = arith.constant 9.99999996E-13 : f32
      %206 = vector.broadcast %cst_85 : f32 to vector<24x1xf32>
      %207 = arith.addf %203, %206 : vector<24x1xf32>
      %208 = math.rsqrt %207 : vector<24x1xf32>
      %209 = vector.broadcast %208 : vector<24x1xf32> to vector<24x128xf32>
      %210 = arith.mulf %205, %209 : vector<24x128xf32>
      %211 = vector.broadcast %189 : vector<1x128xf32> to vector<24x128xf32>
      %212 = arith.mulf %210, %211 : vector<24x128xf32>
      %213 = vector.broadcast %190 : vector<1x128xf32> to vector<24x128xf32>
      %214 = arith.addf %212, %213 : vector<24x128xf32>
      %c0_86 = arith.constant 0 : index
      %c0_87 = arith.constant 0 : index
      %215 = vector.load %arg19[%c0_86, %c0_87] : memref<24x128xf32, #tpu.memory_space<vmem>>, vector<24x128xf32>
      tpu.vector_store %arg19[%c0_86, %c0_87], %214 {strides = array<i32>} : memref<24x128xf32, #tpu.memory_space<vmem>>, vector<24x128xf32>,
    } else {
    }
    %c0 = arith.constant 0 : index
    %c0_4 = arith.constant 0 : index
    %23 = vector.load %arg19[%c0, %c0_4] : memref<24x128xf32, #tpu.memory_space<vmem>>, vector<24x128xf32>
    %c0_5 = arith.constant 0 : index
    %c0_6 = arith.constant 0 : index
    %c0_7 = arith.constant 0 : index
    %24 = vector.load %arg3[%c0_5, %c0_6, %c0_7] : memref<3x1x8xf32, #tpu.memory_space<vmem>>, vector<3x1x8xf32>
    %25 = arith.truncf %23 : vector<24x128xf32> to vector<24x128xbf16>
    %c0_8 = arith.constant 0 : index
    %c0_9 = arith.constant 0 : index
    %c0_10 = arith.constant 0 : index
    %26 = vector.load %arg4[%c0_8, %c0_9, %c0_10] : memref<1x128x384xbf16, #tpu.memory_space<vmem>>, vector<1x128x384xbf16>
    %27 = vector.shape_cast %26 : vector<1x128x384xbf16> to vector<128x384xbf16>
    %cst = arith.constant dense<0.000000e+00> : vector<24x384xf32>
    %28 = tpu.matmul %25, %27, %cst {dimension_numbers = #tpu.dot_dimension_numbers<[1], [0], [0], [1], [0, 0, 1, 1], [], []>} : vector<24x128xbf16>, vector<128x384xbf16>, vector<24x384xf32> -> vector<24x384xf32>
    %c0_11 = arith.constant 0 : index
    %c0_12 = arith.constant 0 : index
    %c0_13 = arith.constant 0 : index
    %29 = vector.load %arg5[%c0_11, %c0_12, %c0_13] : memref<1x1x384xf32, #tpu.memory_space<vmem>>, vector<1x1x384xf32>
    %30 = vector.shape_cast %29 : vector<1x1x384xf32> to vector<1x384xf32>
    %31 = vector.broadcast %30 : vector<1x384xf32> to vector<24x384xf32>
    %32 = arith.addf %28, %31 : vector<24x384xf32>
    %33 = vector.extract_strided_slice %32 {offsets = [0, 0], sizes = [24, 128], strides = [1, 1]} : vector<24x384xf32> to vector<24x128xf32>
    %34 = vector.shape_cast %33 : vector<24x128xf32> to vector<3x8x128xf32>
    %35 = vector.extract_strided_slice %32 {offsets = [0, 128], sizes = [24, 128], strides = [1, 1]} : vector<24x384xf32> to vector<24x128xf32>
    %36 = vector.shape_cast %35 : vector<24x128xf32> to vector<3x8x128xf32>
    %37 = arith.truncf %36 : vector<3x8x128xf32> to vector<3x8x128xbf16>
    %38 = vector.extract_strided_slice %32 {offsets = [0, 256], sizes = [24, 128], strides = [1, 1]} : vector<24x384xf32> to vector<24x128xf32>
    %39 = vector.shape_cast %38 : vector<24x128xf32> to vector<3x8x128xf32>
    %40 = vector.broadcast %12 : vector<1x1x128xf32> to vector<3x8x128xf32>
    %41 = arith.mulf %34, %40 : vector<3x8x128xf32>
    %42 = arith.truncf %41 : vector<3x8x128xf32> to vector<3x8x128xbf16>
    "tpu.trace_start"() <{level = 10 : i32, message = "bqd,bkd->bqk"}> : () -> ()
    %cst_14 = arith.constant dense<0.000000e+00> : vector<3x8x8xf32>
    %43 = tpu.matmul %42, %37, %cst_14 {dimension_numbers = #tpu.dot_dimension_numbers<[2], [2], [1], [1], [0, 0, 0, 1, 1, 1], [0], [0]>} : vector<3x8x128xbf16>, vector<3x8x128xbf16>, vector<3x8x8xf32> -> vector<3x8x8xf32>
    "tpu.trace_stop"() : () -> ()
    %cst_15 = arith.constant 2.500000e-01 : f32
    %44 = vector.broadcast %cst_15 : f32 to vector<3x8x8xf32>
    %45 = arith.mulf %43, %44 : vector<3x8x8xf32>
    %46 = vector.broadcast %24 : vector<3x1x8xf32> to vector<3x8x8xf32>
    %47 = arith.addf %45, %46 : vector<3x8x8xf32>
    %cst_16 = arith.constant dense<0xFF800000> : vector<3x8xf32>
    %48 = vector.multi_reduction <maximumf>, %47, %cst_16 [2] : vector<3x8x8xf32> to vector<3x8xf32>
    %49 = vector.shape_cast %48 : vector<3x8xf32> to vector<3x8x1xf32>
    %50 = vector.broadcast %49 : vector<3x8x1xf32> to vector<3x8x8xf32>
    %51 = arith.subf %47, %50 : vector<3x8x8xf32>
    %52 = math.exp %51 : vector<3x8x8xf32>
    %cst_17 = arith.constant dense<0.000000e+00> : vector<3x8xf32>
    %53 = vector.multi_reduction <add>, %52, %cst_17 [2] : vector<3x8x8xf32> to vector<3x8xf32>
    %54 = vector.shape_cast %53 : vector<3x8xf32> to vector<3x8x1xf32>
    %55 = tpu.reciprocal %54 {approx = true} : vector<3x8x1xf32> -> vector<3x8x1xf32>
    %56 = vector.broadcast %55 : vector<3x8x1xf32> to vector<3x8x8xf32>
    %57 = arith.mulf %52, %56 : vector<3x8x8xf32>
    %58 = vector.broadcast %12 : vector<1x1x128xf32> to vector<3x8x128xf32>
    %59 = arith.mulf %39, %58 : vector<3x8x128xf32>
    %60 = arith.truncf %59 : vector<3x8x128xf32> to vector<3x8x128xbf16>
    %61 = arith.truncf %57 : vector<3x8x8xf32> to vector<3x8x8xbf16>
    "tpu.trace_start"() <{level = 10 : i32, message = "bqk,bkd->bqd"}> : () -> ()
    %cst_18 = arith.constant dense<0.000000e+00> : vector<3x8x128xf32>
    %62 = tpu.matmul %61, %60, %cst_18 {dimension_numbers = #tpu.dot_dimension_numbers<[2], [1], [1], [2], [0, 0, 0, 1, 1, 2], [0], [0]>} : vector<3x8x8xbf16>, vector<3x8x128xbf16>, vector<3x8x128xf32> -> vector<3x8x128xf32>
    "tpu.trace_stop"() : () -> ()
    %63 = vector.broadcast %19 : vector<1x1x128xf32> to vector<3x8x128xf32>
    %64 = arith.mulf %34, %63 : vector<3x8x128xf32>
    %65 = arith.truncf %64 : vector<3x8x128xf32> to vector<3x8x128xbf16>
    "tpu.trace_start"() <{level = 10 : i32, message = "bqd,bkd->bqk"}> : () -> ()
    %cst_19 = arith.constant dense<0.000000e+00> : vector<3x8x8xf32>
    %66 = tpu.matmul %65, %37, %cst_19 {dimension_numbers = #tpu.dot_dimension_numbers<[2], [2], [1], [1], [0, 0, 0, 1, 1, 1], [0], [0]>} : vector<3x8x128xbf16>, vector<3x8x128xbf16>, vector<3x8x8xf32> -> vector<3x8x8xf32>
    "tpu.trace_stop"() : () -> ()
    %cst_20 = arith.constant 2.500000e-01 : f32
    %67 = vector.broadcast %cst_20 : f32 to vector<3x8x8xf32>
    %68 = arith.mulf %66, %67 : vector<3x8x8xf32>
    %69 = vector.broadcast %24 : vector<3x1x8xf32> to vector<3x8x8xf32>
    %70 = arith.addf %68, %69 : vector<3x8x8xf32>
    %cst_21 = arith.constant dense<0xFF800000> : vector<3x8xf32>
    %71 = vector.multi_reduction <maximumf>, %70, %cst_21 [2] : vector<3x8x8xf32> to vector<3x8xf32>
    %72 = vector.shape_cast %71 : vector<3x8xf32> to vector<3x8x1xf32>
    %73 = vector.broadcast %72 : vector<3x8x1xf32> to vector<3x8x8xf32>
    %74 = arith.subf %70, %73 : vector<3x8x8xf32>
    %75 = math.exp %74 : vector<3x8x8xf32>
    %cst_22 = arith.constant dense<0.000000e+00> : vector<3x8xf32>
    %76 = vector.multi_reduction <add>, %75, %cst_22 [2] : vector<3x8x8xf32> to vector<3x8xf32>
    %77 = vector.shape_cast %76 : vector<3x8xf32> to vector<3x8x1xf32>
    %78 = tpu.reciprocal %77 {approx = true} : vector<3x8x1xf32> -> vector<3x8x1xf32>
    %79 = vector.broadcast %78 : vector<3x8x1xf32> to vector<3x8x8xf32>
    %80 = arith.mulf %75, %79 : vector<3x8x8xf32>
    %81 = vector.broadcast %19 : vector<1x1x128xf32> to vector<3x8x128xf32>
    %82 = arith.mulf %39, %81 : vector<3x8x128xf32>
    %83 = arith.truncf %82 : vector<3x8x128xf32> to vector<3x8x128xbf16>
    %84 = arith.truncf %80 : vector<3x8x8xf32> to vector<3x8x8xbf16>
    "tpu.trace_start"() <{level = 10 : i32, message = "bqk,bkd->bqd"}> : () -> ()
    %cst_23 = arith.constant dense<0.000000e+00> : vector<3x8x128xf32>
    %85 = tpu.matmul %84, %83, %cst_23 {dimension_numbers = #tpu.dot_dimension_numbers<[2], [1], [1], [2], [0, 0, 0, 1, 1, 2], [0], [0]>} : vector<3x8x8xbf16>, vector<3x8x128xbf16>, vector<3x8x128xf32> -> vector<3x8x128xf32>
    "tpu.trace_stop"() : () -> ()
    %86 = arith.addf %62, %85 : vector<3x8x128xf32>
    %87 = vector.shape_cast %86 : vector<3x8x128xf32> to vector<24x128xf32>
    %88 = arith.truncf %87 : vector<24x128xf32> to vector<24x128xbf16>
    %c0_24 = arith.constant 0 : index
    %c0_25 = arith.constant 0 : index
    %c0_26 = arith.constant 0 : index
    %89 = vector.load %arg6[%c0_24, %c0_25, %c0_26] : memref<1x128x128xbf16, #tpu.memory_space<vmem>>, vector<1x128x128xbf16>
    %90 = vector.shape_cast %89 : vector<1x128x128xbf16> to vector<128x128xbf16>
    %cst_27 = arith.constant dense<0.000000e+00> : vector<24x128xf32>
    %91 = tpu.matmul %88, %90, %cst_27 {dimension_numbers = #tpu.dot_dimension_numbers<[1], [0], [0], [1], [0, 0, 1, 1], [], []>} : vector<24x128xbf16>, vector<128x128xbf16>, vector<24x128xf32> -> vector<24x128xf32>
    %c0_28 = arith.constant 0 : index
    %c0_29 = arith.constant 0 : index
    %c0_30 = arith.constant 0 : index
    %92 = vector.load %arg7[%c0_28, %c0_29, %c0_30] : memref<1x1x128xf32, #tpu.memory_space<vmem>>, vector<1x1x128xf32>
    %93 = vector.shape_cast %92 : vector<1x1x128xf32> to vector<1x128xf32>
    %94 = vector.broadcast %93 : vector<1x128xf32> to vector<24x128xf32>
    %95 = arith.addf %91, %94 : vector<24x128xf32>
    %96 = arith.addf %95, %23 : vector<24x128xf32>
    %c0_31 = arith.constant 0 : index
    %c0_32 = arith.constant 0 : index
    %c0_33 = arith.constant 0 : index
    %97 = vector.load %arg8[%c0_31, %c0_32, %c0_33] : memref<1x1x128xf32, #tpu.memory_space<vmem>>, vector<1x1x128xf32>
    %98 = vector.shape_cast %97 : vector<1x1x128xf32> to vector<1x128xf32>
    %c0_34 = arith.constant 0 : index
    %c0_35 = arith.constant 0 : index
    %c0_36 = arith.constant 0 : index
    %99 = vector.load %arg9[%c0_34, %c0_35, %c0_36] : memref<1x1x128xf32, #tpu.memory_space<vmem>>, vector<1x1x128xf32>
    %100 = vector.shape_cast %99 : vector<1x1x128xf32> to vector<1x128xf32>
    %cst_37 = arith.constant dense<0.000000e+00> : vector<24xf32>
    %101 = vector.multi_reduction <add>, %96, %cst_37 [1] : vector<24x128xf32> to vector<24xf32>
    %102 = vector.shape_cast %101 : vector<24xf32> to vector<24x1xf32>
    %cst_38 = arith.constant 3.125000e-02 : f32
    %103 = vector.broadcast %cst_38 : f32 to vector<24x1xf32>
    %104 = arith.mulf %102, %103 : vector<24x1xf32>
    %105 = vector.broadcast %104 : vector<24x1xf32> to vector<24x128xf32>
    %106 = arith.subf %96, %105 : vector<24x128xf32>
    %107 = vector.broadcast %4 : vector<1x128xf32> to vector<24x128xf32>
    %108 = arith.mulf %106, %107 : vector<24x128xf32>
    %109 = arith.mulf %108, %108 : vector<24x128xf32>
    %cst_39 = arith.constant dense<0.000000e+00> : vector<24xf32>
    %110 = vector.multi_reduction <add>, %109, %cst_39 [1] : vector<24x128xf32> to vector<24xf32>
    %111 = vector.shape_cast %110 : vector<24xf32> to vector<24x1xf32>
    %cst_40 = arith.constant 3.125000e-02 : f32
    %112 = vector.broadcast %cst_40 : f32 to vector<24x1xf32>
    %113 = arith.mulf %111, %112 : vector<24x1xf32>
    %114 = vector.broadcast %104 : vector<24x1xf32> to vector<24x128xf32>
    %115 = arith.subf %96, %114 : vector<24x128xf32>
    %cst_41 = arith.constant 9.99999996E-13 : f32
    %116 = vector.broadcast %cst_41 : f32 to vector<24x1xf32>
    %117 = arith.addf %113, %116 : vector<24x1xf32>
    %118 = math.rsqrt %117 : vector<24x1xf32>
    %119 = vector.broadcast %118 : vector<24x1xf32> to vector<24x128xf32>
    %120 = arith.mulf %115, %119 : vector<24x128xf32>
    %121 = vector.broadcast %98 : vector<1x128xf32> to vector<24x128xf32>
    %122 = arith.mulf %120, %121 : vector<24x128xf32>
    %123 = vector.broadcast %100 : vector<1x128xf32> to vector<24x128xf32>
    %124 = arith.addf %122, %123 : vector<24x128xf32>
    %125 = arith.truncf %124 : vector<24x128xf32> to vector<24x128xbf16>
    %c0_42 = arith.constant 0 : index
    %c0_43 = arith.constant 0 : index
    %c0_44 = arith.constant 0 : index
    %126 = vector.load %arg10[%c0_42, %c0_43, %c0_44] : memref<1x128x128xbf16, #tpu.memory_space<vmem>>, vector<1x128x128xbf16>
    %127 = vector.shape_cast %126 : vector<1x128x128xbf16> to vector<128x128xbf16>
    %cst_45 = arith.constant dense<0.000000e+00> : vector<24x128xf32>
    %128 = tpu.matmul %125, %127, %cst_45 {dimension_numbers = #tpu.dot_dimension_numbers<[1], [0], [0], [1], [0, 0, 1, 1], [], []>} : vector<24x128xbf16>, vector<128x128xbf16>, vector<24x128xf32> -> vector<24x128xf32>
    %c0_46 = arith.constant 0 : index
    %c0_47 = arith.constant 0 : index
    %c0_48 = arith.constant 0 : index
    %129 = vector.load %arg11[%c0_46, %c0_47, %c0_48] : memref<1x1x128xf32, #tpu.memory_space<vmem>>, vector<1x1x128xf32>
    %130 = vector.shape_cast %129 : vector<1x1x128xf32> to vector<1x128xf32>
    %131 = vector.broadcast %130 : vector<1x128xf32> to vector<24x128xf32>
    %132 = arith.addf %128, %131 : vector<24x128xf32>
    %cst_49 = arith.constant 5.000000e-01 : f32
    %133 = vector.broadcast %cst_49 : f32 to vector<24x128xf32>
    %134 = arith.mulf %133, %132 : vector<24x128xf32>
    %cst_50 = arith.constant 4.471500e-02 : f32
    %135 = vector.broadcast %cst_50 : f32 to vector<24x128xf32>
    %136 = arith.mulf %135, %132 : vector<24x128xf32>
    %137 = arith.mulf %136, %132 : vector<24x128xf32>
    %138 = arith.mulf %137, %132 : vector<24x128xf32>
    %139 = arith.addf %132, %138 : vector<24x128xf32>
    %cst_51 = arith.constant 0.797884583 : f32
    %140 = vector.broadcast %cst_51 : f32 to vector<24x128xf32>
    %141 = arith.mulf %140, %139 : vector<24x128xf32>
    %142 = math.tanh %141 : vector<24x128xf32>
    %cst_52 = arith.constant 1.000000e+00 : f32
    %143 = vector.broadcast %cst_52 : f32 to vector<24x128xf32>
    %144 = arith.addf %143, %142 : vector<24x128xf32>
    %145 = arith.mulf %134, %144 : vector<24x128xf32>
    %146 = arith.truncf %145 : vector<24x128xf32> to vector<24x128xbf16>
    %c0_53 = arith.constant 0 : index
    %c0_54 = arith.constant 0 : index
    %c0_55 = arith.constant 0 : index
    %147 = vector.load %arg12[%c0_53, %c0_54, %c0_55] : memref<1x128x128xbf16, #tpu.memory_space<vmem>>, vector<1x128x128xbf16>
    %148 = vector.shape_cast %147 : vector<1x128x128xbf16> to vector<128x128xbf16>
    %cst_56 = arith.constant dense<0.000000e+00> : vector<24x128xf32>
    %149 = tpu.matmul %146, %148, %cst_56 {dimension_numbers = #tpu.dot_dimension_numbers<[1], [0], [0], [1], [0, 0, 1, 1], [], []>} : vector<24x128xbf16>, vector<128x128xbf16>, vector<24x128xf32> -> vector<24x128xf32>
    %c0_57 = arith.constant 0 : index
    %c0_58 = arith.constant 0 : index
    %c0_59 = arith.constant 0 : index
    %150 = vector.load %arg13[%c0_57, %c0_58, %c0_59] : memref<1x1x128xf32, #tpu.memory_space<vmem>>, vector<1x1x128xf32>
    %151 = vector.shape_cast %150 : vector<1x1x128xf32> to vector<1x128xf32>
    %152 = vector.broadcast %151 : vector<1x128xf32> to vector<24x128xf32>
    %153 = arith.addf %149, %152 : vector<24x128xf32>
    %154 = arith.addf %153, %124 : vector<24x128xf32>
    %c0_60 = arith.constant 0 : index
    %c0_61 = arith.constant 0 : index
    %c0_62 = arith.constant 0 : index
    %155 = vector.load %arg14[%c0_60, %c0_61, %c0_62] : memref<1x1x128xf32, #tpu.memory_space<vmem>>, vector<1x1x128xf32>
    %156 = vector.shape_cast %155 : vector<1x1x128xf32> to vector<1x128xf32>
    %c0_63 = arith.constant 0 : index
    %c0_64 = arith.constant 0 : index
    %c0_65 = arith.constant 0 : index
    %157 = vector.load %arg15[%c0_63, %c0_64, %c0_65] : memref<1x1x128xf32, #tpu.memory_space<vmem>>, vector<1x1x128xf32>
    %158 = vector.shape_cast %157 : vector<1x1x128xf32> to vector<1x128xf32>
    %cst_66 = arith.constant dense<0.000000e+00> : vector<24xf32>
    %159 = vector.multi_reduction <add>, %154, %cst_66 [1] : vector<24x128xf32> to vector<24xf32>
    %160 = vector.shape_cast %159 : vector<24xf32> to vector<24x1xf32>
    %cst_67 = arith.constant 3.125000e-02 : f32
    %161 = vector.broadcast %cst_67 : f32 to vector<24x1xf32>
    %162 = arith.mulf %160, %161 : vector<24x1xf32>
    %163 = vector.broadcast %162 : vector<24x1xf32> to vector<24x128xf32>
    %164 = arith.subf %154, %163 : vector<24x128xf32>
    %165 = vector.broadcast %4 : vector<1x128xf32> to vector<24x128xf32>
    %166 = arith.mulf %164, %165 : vector<24x128xf32>
    %167 = arith.mulf %166, %166 : vector<24x128xf32>
    %cst_68 = arith.constant dense<0.000000e+00> : vector<24xf32>
    %168 = vector.multi_reduction <add>, %167, %cst_68 [1] : vector<24x128xf32> to vector<24xf32>
    %169 = vector.shape_cast %168 : vector<24xf32> to vector<24x1xf32>
    %cst_69 = arith.constant 3.125000e-02 : f32
    %170 = vector.broadcast %cst_69 : f32 to vector<24x1xf32>
    %171 = arith.mulf %169, %170 : vector<24x1xf32>
    %172 = vector.broadcast %162 : vector<24x1xf32> to vector<24x128xf32>
    %173 = arith.subf %154, %172 : vector<24x128xf32>
    %cst_70 = arith.constant 9.99999996E-13 : f32
    %174 = vector.broadcast %cst_70 : f32 to vector<24x1xf32>
    %175 = arith.addf %171, %174 : vector<24x1xf32>
    %176 = math.rsqrt %175 : vector<24x1xf32>
    %177 = vector.broadcast %176 : vector<24x1xf32> to vector<24x128xf32>
    %178 = arith.mulf %173, %177 : vector<24x128xf32>
    %179 = vector.broadcast %156 : vector<1x128xf32> to vector<24x128xf32>
    %180 = arith.mulf %178, %179 : vector<24x128xf32>
    %181 = vector.broadcast %158 : vector<1x128xf32> to vector<24x128xf32>
    %182 = arith.addf %180, %181 : vector<24x128xf32>
    %c0_71 = arith.constant 0 : index
    %c0_72 = arith.constant 0 : index
    %183 = vector.load %arg19[%c0_71, %c0_72] : memref<24x128xf32, #tpu.memory_space<vmem>>, vector<24x128xf32>
    tpu.vector_store %arg19[%c0_71, %c0_72], %182 {strides = array<i32>} : memref<24x128xf32, #tpu.memory_space<vmem>>, vector<24x128xf32>,
    %c1_i32 = arith.constant 1 : i32
    %184 = arith.cmpi eq, %arg1, %c1_i32 : i32
    %185 = arith.extui %184 : i1 to i32
    %c0_i32_73 = arith.constant 0 : i32
    %186 = arith.cmpi ne, %185, %c0_i32_73 : i32
    scf.if %186 {
      %187 = vector.shape_cast %182 : vector<24x128xf32> to vector<3x8x128xf32>
      %188 = vector.extract_strided_slice %187 {offsets = [0, 0, 0], sizes = [3, 1, 128], strides = [1, 1, 1]} : vector<3x8x128xf32> to vector<3x1x128xf32>
      %c0_74 = arith.constant 0 : index
      %c0_75 = arith.constant 0 : index
      %c0_76 = arith.constant 0 : index
      %189 = vector.load %arg18[%c0_74, %c0_75, %c0_76] : memref<3x1x128xf32, #tpu.memory_space<vmem>>, vector<3x1x128xf32>
      tpu.vector_store %arg18[%c0_74, %c0_75, %c0_76], %188 {strides = array<i32>} : memref<3x1x128xf32, #tpu.memory_space<vmem>>, vector<3x1x128xf32>,
    } else {
    }
    return
  }
  func.func @transform_0(%arg0: i32, %arg1: i32) -> (i32, i32, i32) {
    %c0_i32 = arith.constant 0 : i32
    %c0_i32_0 = arith.constant 0 : i32
    %c0_i32_1 = arith.constant 0 : i32
    return %arg0, %c0_i32, %c0_i32_0 : i32, i32, i32
  }
  func.func @transform_1(%arg0: i32, %arg1: i32) -> (i32, i32, i32) {
    %c0_i32 = arith.constant 0 : i32
    %c0_i32_0 = arith.constant 0 : i32
    %c0_i32_1 = arith.constant 0 : i32
    return %arg0, %c0_i32, %c0_i32_0 : i32, i32, i32
  }
  func.func @transform_2(%arg0: i32, %arg1: i32) -> (i32, i32, i32) {
    %c0_i32 = arith.constant 0 : i32
    %c0_i32_0 = arith.constant 0 : i32
    %c0_i32_1 = arith.constant 0 : i32
    return %arg1, %c0_i32, %c0_i32_0 : i32, i32, i32
  }
  func.func @transform_3(%arg0: i32, %arg1: i32) -> (i32, i32, i32) {
    %c0_i32 = arith.constant 0 : i32
    %c0_i32_0 = arith.constant 0 : i32
    %c0_i32_1 = arith.constant 0 : i32
    return %arg1, %c0_i32, %c0_i32_0 : i32, i32, i32
  }
  func.func @transform_4(%arg0: i32, %arg1: i32) -> (i32, i32, i32) {
    %c0_i32 = arith.constant 0 : i32
    %c0_i32_0 = arith.constant 0 : i32
    %c0_i32_1 = arith.constant 0 : i32
    return %arg1, %c0_i32, %c0_i32_0 : i32, i32, i32
  }
  func.func @transform_5(%arg0: i32, %arg1: i32) -> (i32, i32, i32) {
    %c0_i32 = arith.constant 0 : i32
    %c0_i32_0 = arith.constant 0 : i32
    %c0_i32_1 = arith.constant 0 : i32
    return %arg1, %c0_i32, %c0_i32_0 : i32, i32, i32
  }
  func.func @transform_6(%arg0: i32, %arg1: i32) -> (i32, i32, i32) {
    %c0_i32 = arith.constant 0 : i32
    %c0_i32_0 = arith.constant 0 : i32
    %c0_i32_1 = arith.constant 0 : i32
    return %arg1, %c0_i32, %c0_i32_0 : i32, i32, i32
  }
  func.func @transform_7(%arg0: i32, %arg1: i32) -> (i32, i32, i32) {
    %c0_i32 = arith.constant 0 : i32
    %c0_i32_0 = arith.constant 0 : i32
    %c0_i32_1 = arith.constant 0 : i32
    return %arg1, %c0_i32, %c0_i32_0 : i32, i32, i32
  }
  func.func @transform_8(%arg0: i32, %arg1: i32) -> (i32, i32, i32) {
    %c0_i32 = arith.constant 0 : i32
    %c0_i32_0 = arith.constant 0 : i32
    %c0_i32_1 = arith.constant 0 : i32
    return %arg1, %c0_i32, %c0_i32_0 : i32, i32, i32
  }
  func.func @transform_9(%arg0: i32, %arg1: i32) -> (i32, i32, i32) {
    %c0_i32 = arith.constant 0 : i32
    %c0_i32_0 = arith.constant 0 : i32
    %c0_i32_1 = arith.constant 0 : i32
    return %arg1, %c0_i32, %c0_i32_0 : i32, i32, i32
  }
  func.func @transform_10(%arg0: i32, %arg1: i32) -> (i32, i32, i32) {
    %c0_i32 = arith.constant 0 : i32
    %c0_i32_0 = arith.constant 0 : i32
    %c0_i32_1 = arith.constant 0 : i32
    return %arg1, %c0_i32, %c0_i32_0 : i32, i32, i32
  }
  func.func @transform_11(%arg0: i32, %arg1: i32) -> (i32, i32, i32) {
    %c0_i32 = arith.constant 0 : i32
    %c0_i32_0 = arith.constant 0 : i32
    %c0_i32_1 = arith.constant 0 : i32
    return %arg1, %c0_i32, %c0_i32_0 : i32, i32, i32
  }
  func.func @transform_12(%arg0: i32, %arg1: i32) -> (i32, i32, i32) {
    %c0_i32 = arith.constant 0 : i32
    %c0_i32_0 = arith.constant 0 : i32
    %c0_i32_1 = arith.constant 0 : i32
    return %arg1, %c0_i32, %c0_i32_0 : i32, i32, i32
  }
  func.func @transform_13(%arg0: i32, %arg1: i32) -> (i32, i32, i32) {
    %c0_i32 = arith.constant 0 : i32
    %c0_i32_0 = arith.constant 0 : i32
    %c0_i32_1 = arith.constant 0 : i32
    return %arg1, %c0_i32, %c0_i32_0 : i32, i32, i32
  }
  func.func @transform_14(%arg0: i32, %arg1: i32) -> (i32, i32) {
    %c0_i32 = arith.constant 0 : i32
    %c0_i32_0 = arith.constant 0 : i32
    %c0_i32_1 = arith.constant 0 : i32
    return %c0_i32, %c0_i32_0 : i32, i32
  }
  func.func @transform_15(%arg0: i32, %arg1: i32) -> (i32, i32) {
    %c0_i32 = arith.constant 0 : i32
    %c0_i32_0 = arith.constant 0 : i32
    %c0_i32_1 = arith.constant 0 : i32
    return %c0_i32, %c0_i32_0 : i32, i32
  }
  func.func @transform_16(%arg0: i32, %arg1: i32) -> (i32, i32, i32) {
    %c0_i32 = arith.constant 0 : i32
    %c0_i32_0 = arith.constant 0 : i32
    %c0_i32_1 = arith.constant 0 : i32
    return %arg0, %c0_i32, %c0_i32_0 : i32, i32, i32
  }
}

</mosaic_0001>

<bundles_post_ra>
// kernel: tpu_custom_call.1
= control target key start
LH: loop header
LB: loop body
LE: loop exit
PB: predicated region body
PF: predicated region fallthrough
CT: control target
= control target key end

     0   :  { %s4356_s0 = inlined_call_operand.hbm [shape: f32[6,8,128], index: 0, kind: input, shape index: {}]   ;;  %s4357_s1 = inlined_call_operand.hbm [shape: f32[6,1,8], index: 1, kind: input, shape index: {}]   ;;  %s4358_s2 = inlined_call_operand.hbm [shape: bf16[2,128,384], index: 2, kind: input, shape index: {}]   ;;  %s4359_s3 = inlined_call_operand.hbm [shape: f32[2,1,384], index: 3, kind: input, shape index: {}]   ;;  %s4360_s4 = inlined_call_operand.hbm [shape: bf16[2,128,128], index: 4, kind: input, shape index: {}]   ;;  %s4361_s5 = inlined_call_operand.vmem [shape: f32[2,1,128], index: 5, kind: input, shape index: {}]   ;;  %s4362_s6 = inlined_call_operand.vmem [shape: f32[2,1,128], index: 6, kind: input, shape index: {}]   ;;  %s4363_s7 = inlined_call_operand.vmem [shape: f32[2,1,128], index: 7, kind: input, shape index: {}]   ;;  %s4364_s8 = inlined_call_operand.hbm [shape: bf16[2,128,128], index: 8, kind: input, shape index: {}]   ;;  %s4365_s9 = inlined_call_operand.vmem [shape: f32[2,1,128], index: 9, kind: input, shape index: {}]   ;;  %s4366_s10 = inlined_call_operand.hbm [shape: bf16[2,128,128], index: 10, kind: input, shape index: {}]   ;;  %s4367_s11 = inlined_call_operand.vmem [shape: f32[2,1,128], index: 11, kind: input, shape index: {}]   ;;  %s4368_s12 = inlined_call_operand.vmem [shape: f32[2,1,128], index: 12, kind: input, shape index: {}]   ;;  %s4369_s13 = inlined_call_operand.vmem [shape: f32[2,1,128], index: 13, kind: input, shape index: {}]   ;;  %s4370_s14 = inlined_call_operand.vmem [shape: f32[1,128], index: 14, kind: input, shape index: {}]   ;;  %s4371_s15 = inlined_call_operand.vmem [shape: f32[1,128], index: 15, kind: input, shape index: {}]   ;;  %s4372_s16 = inlined_call_operand.hbm [shape: f32[6,1,128], index: 16, kind: output, shape index: {}]  }
   0x1   :  { %4399 = sst [smem:[#allocation41_spill]] %s4356_s0 }
   0x2   :  { %4400 = sst [smem:[#allocation42_spill]] %s4357_s1 }
   0x3   :  { %4401 = sst [smem:[#allocation43_spill]] %s4358_s2 }
   0x4   :  { %4402 = sst [smem:[#allocation44_spill]] %s4359_s3 }
   0x5   :  { %4403 = sst [smem:[#allocation45_spill]] %s4360_s4 }
   0x6   :  { %4404 = sst [smem:[#allocation46_spill]] %s4361_s5 }
   0x7   :  { %4405 = sst [smem:[#allocation47_spill]] %s4362_s6 }
   0x8   :  { %4406 = sst [smem:[#allocation48_spill]] %s4363_s7 }
   0x9   :  { %4407 = sst [smem:[#allocation49_spill]] %s4364_s8 }
   0xa   :  { %4408 = sst [smem:[#allocation50_spill]] %s4365_s9 }
   0xb   :  { %4409 = sst [smem:[#allocation51_spill]] %s4366_s10 }
   0xc   :  { %4410 = sst [smem:[#allocation52_spill]] %s4367_s11 }
   0xd   :  { %4411 = sst [smem:[#allocation53_spill]] %s4368_s12 }
   0xe   :  { %4412 = sst [smem:[#allocation54_spill]] %s4369_s13 }
   0xf   :  { %4413 = sst [smem:[#allocation55_spill]] %s4370_s14 }
  0x10   :  { %4414 = sst [smem:[#allocation56_spill]] %s4371_s15 }
  0x11   :  { %4415 = sst [smem:[#allocation57_spill]] %s4372_s16 }
  0x12   :  { %21 = vsyncpa [#allocation4], 0 }
  0x13   :  { %23 = vsyncpa [#allocation4 + $0x1], 0 }
  0x14   :  { %24 = vsyncpa [#allocation7], 0 }
  0x15   :  { %26 = vsyncpa [#allocation7 + $0x1], 0 }
  0x16   :  { %27 = vsyncpa [#allocation10], 0 }
  0x17   :  { %29 = vsyncpa [#allocation10 + $0x1], 0 }
  0x18   :  { %30 = vsyncpa [#allocation13], 0 }
  0x19   :  { %32 = vsyncpa [#allocation13 + $0x1], 0 }
  0x1a   :  { %33 = vsyncpa [#allocation5], 0 }
  0x1b   :  { %35 = vsyncpa [#allocation5 + $0x1], 0  ;;  %s3718_s21 = smov 0   ;;  %s3720_s22 = smov 0  }
  0x1c   :  { %s3722_s23 = smov 0   ;;  %s3724_s24 = smov 0  }
  0x1d   :  { %s3726_s25 = smov 0   ;;  %s3728_s26 = smov 0  }
  0x1e   :  { %s3730_s27 = smov 0   ;;  %s3732_s28 = smov 0  }
  0x1f   :  { %s3734_s29 = smov 0   ;;  %s3736_s30 = smov 0  }
  0x20   :  { %s3738_s0 = smov 0  }
  0x21 LB: > { %4416 = sst [smem:[#allocation22_spill]] %s3574_s22  ;;  %s3774_s17 = sadd.s32 4294967295, %s3610_s0   ;;  %s3610_s0 = sphi %s3738_s0, %s41_s0   ;;  %s3606_s30 = sphi %s3736_s30, %s4504_s30   ;;  %s3602_s29 = sphi %s3734_s29, %s4503_s29   ;;  %s3598_s28 = sphi %s3732_s28, %s4502_s28   ;;  %s3594_s27 = sphi %s3730_s27, %s4501_s27   ;;  %s3590_s26 = sphi %s3728_s26, %s4498_s26   ;;  %s3586_s25 = sphi %s3726_s25, %s4497_s25   ;;  %s3582_s24 = sphi %s3724_s24, %s4496_s24   ;;  %s3578_s23 = sphi %s3722_s23, %s4495_s23   ;;  %s3574_s22 = sphi %s3720_s22, %s4494_s22   ;;  %s3570_s21 = sphi %s3718_s21, %s4493_s21  }
  0x22   : > { %4417 = sst [smem:[#allocation23_spill]] %s3578_s23  ;;  %s2703_s18 = sadd.s32 4294967294, %s3610_s0  }
  0x23   : > { %4418 = sst [smem:[#allocation24_spill]] %s3582_s24  ;;  %p67_p0 = scmp.ne.s32.totalorder %s3590_s26, %s3586_s25 }
  0x24   : > { %4419 = sst [smem:[#allocation25_spill]] %s3586_s25  ;;  %p68_p1 = scmp.eq.s32.totalorder %s3610_s0, 0 }
  0x25   : > { %4420 = sst [smem:[#allocation26_spill]] %s3590_s26  ;;  %p73_p2 = scmp.ne.s32.totalorder %s3586_s25, %s3582_s24 }
  0x26   : > { %4421 = sst [smem:[#allocation27_spill]] %s3594_s27  ;;  %p477_p3 = scmp.eq.s32.totalorder %s3774_s17, 3 }
  0x27   : > { %4422 = sst [smem:[#allocation28_spill]] %s3598_s28  ;;  %p69_p4 = por %p68_p1, %p67_p0 }
  0x28   : > { %4423 = sst [smem:[#allocation29_spill]] %s3610_s0  ;;  %p483_p5 = scmp.eq.s32.totalorder %s2703_s18, 3 }
  0x29   : > { %4424 = sst [smem:[#allocation30_spill]] %s3774_s17  ;;  %p3787_p6 = por %p477_p3, %p67_p0 }
  0x2a   : > { %p3794_p7 = por %p483_p5, %p73_p2  ;;  %p4378_p8 = scmp.lt.s32.totalorder %s3610_s0, 4 }
  0x2b   : > { %s4425_s16 = scalar_select %p3787_p6, 1, 0 }
  0x2c   : > { %s4427_s28 = scalar_select %p3794_p7, 1, 0 }
  0x2d   : > { %4426 = sst [smem:[#allocation31_spill]] %s4425_s16  ;;  %s3800_s19 = sand.u32 1, %s3590_s26  }
  0x2e   : > { %4428 = sst [smem:[#allocation32_spill]] %s4427_s28  ;;  %s3803_s20 = sand.u32 1, %s3610_s0  }
  0x2f   : > { %p3807_p9 = pnand %p4378_p8, %p69_p4  ;;  %s3020_s18 = smul.u32 3, %s3800_s19 }
  0x30   : > { %s2798_s16 = smul.u32 48, %s3606_s30  ;;  %s4430_s1 = sld [smem:[#allocation42_spill]] }
  0x31   : > { %s534_s12 = scalar_lea.vmem [#allocation6], %s3020_s18  ;;  %p2719_p10 = scmp.ge.s32.totalorder %s3610_s0, 1 }
  0x32   : > { %s541_s11 = sshll.u32 %s534_s12, 4  ;;  %s4380_s9 = scalar_lea.sflag [#allocation7], %s3803_s20  ;;  %s542_s11 = int_to_ptr.vmem [resolvable:$true] %s541_s11 }
  0x33   : > { %p4379_p11 = pneg %p3807_p9  ;;  %s3291_s7 = scalar_lea.vmem %s542_s11, 48 }
  0x34   : > { %p3292_p12 = scmp.ne.s32.totalorder %s542_s11, %s3291_s7  ;;  %s3612_s6 = smov [#allocation6]  }
  0x35   : > { %s3296_s5 = sshll.u32 %s3612_s6, 4  ;;  %s3297_s5 = int_to_ptr.vmem [resolvable:$false] %s3296_s5 }
  0x36   : > { %s540_s28 = scalar_lea.hbm %s4430_s1, %s2798_s16  ;;  %p3294_p13 = pnand %p3292_p12, %p4379_p11 }
  0x37   : > { %s3298_s27 = scalar_lea.vmem %s3297_s5, 96  ;;  %p3299_p3 = scmp.lt.s32.totalorder %s542_s11, %s3297_s5 }
  0x38   : > { %p3295_p0 = pneg %p3294_p13  ;;  %p3300_p4 = scmp.lt.s32.totalorder %s3298_s27, %s3291_s7 }
  0x3a   : > { %p3301_p5 = por %p3300_p4, %p3299_p3 }
  0x3c   : > { %p3302_p8 = pnand %p3301_p5, %p3295_p0 }
  0x3e   : > { %3305 = shalt.err (!%p3302_p8)
}
  0x3f   : > { %s3613_s12 = smov 16   ;;  %s3614_s5 = smov 1  }
  0x40   : > { %3051 = dma.hbm_to_vmem [thread:$0]  (!%p3807_p9), %s540_s28, 48, %s542_s11, %s4380_s9, %s3613_s12, %s3613_s12, %s3614_s5  }
  0x41   : > { %p694_p8 = scmp.lt.s32.totalorder %s3610_s0, 5  ;;  %s50_s7 = sadd.s32 1, %s3602_s29 }
  0x42   : > { %p74_p13 = scmp.eq.s32.totalorder %s3774_s17, 0  ;;  %p51_p0 = scmp.ge.s32.totalorder %s50_s7, 2 }
  0x43   : > { %p3830_p12 = pnand %p2719_p10, %p694_p8  ;;  %s112_s13 = sadd.s32 1, %s3578_s23 }
  0x44   : > { %p3842_p3 = por %p74_p13, %p73_p2  ;;  %p119_p4 = scmp.ne.s32.totalorder %s3578_s23, %s3574_s22 }
  0x45   : > { %s4431_s6 = scalar_select %p3830_p12, 1, 0 }
  0x46   : > { %s4433_s14 = scalar_select %p3842_p3, 1, 0 }
  0x47   : > { %4432 = sst [smem:[#allocation33_spill]] %s4431_s6  ;;  %s4506_s7 = smov (%p51_p0, %s50_s7), 0 }
  0x48   : > { %4434 = sst [smem:[#allocation34_spill]] %s4433_s14  ;;  %s4436_s11 = sadd.s32 1, %s3606_s30 }
  0x49   : > { %4435 = sst [smem:[#allocation35_spill]] %s4506_s7  ;;  %s4508_s11 = smov (!%p51_p0, %s4436_s11), %s3606_s30 }
  0x4a   : > { %s109_s16 = ssub.s32 %s3602_s29, %s4506_s7  ;;  %p121_p10 = por %p119_p4, %p68_p1 }
  0x4b   : > { %p55_p5 = scmp.ge.s32.totalorder %s4508_s11, 2  ;;  %p110_p8 = scmp.eq.s32.totalorder %s109_s16, 0 }
  0x4c   : > { %p125_p11 = scmp.ne.s32.totalorder %s3574_s22, %s3570_s21  ;;  %s553_s27 = sand.u32 1, %s3578_s23  }
  0x4d   : > { %s4510_s11 = smov (%p55_p5, %s4508_s11), 0  ;;  %s3021_s5 = smul.u32 192, %s553_s27 }
  0x4e   : > { %4437 = sst [smem:[#allocation36_spill]] %s4510_s11  ;;  %s57_s18 = ssub.s32 %s3606_s30, %s4510_s11 }
  0x4f   : > { %s3863_s28 = scalar_select %p110_p8, %s3578_s23, %s112_s13  }
  0x50   : > { %p3869_p2 = por %p125_p11, %p74_p13  ;;  %p58_p0 = scmp.eq.s32.totalorder %s57_s18, 0 }
  0x51   : > { %4438 = sst [smem:[#allocation37_spill]] %s3863_s28  ;;  %p4441_p1 = scmp.lt.s32.totalorder %s3610_s0, 4 }
  0x52   : > { %s4439_s12 = scalar_select %p3869_p2, 1, 0 }
  0x53   : > { %p3875_p4 = pnand %p4441_p1, %p121_p10  ;;  %s4443_s21 = sadd.s32 1, %s3590_s26 }
  0x54   : > { %4440 = sst [smem:[#allocation38_spill]] %s4439_s12  ;;  %s555_s13 = scalar_lea.vmem [#allocation8], %s3021_s5 }
  0x55   : > { %s3882_s16 = scalar_select %p58_p0, %s3590_s26, %s4443_s21  }
  0x56   : > { %s562_s1 = sshll.u32 %s555_s13, 4  ;;  %s3023_s11 = smul.u32 3, %s553_s27  ;;  %s3884_s1 = int_to_ptr.vmem [resolvable:$true] %s562_s1 }
  0x57   : > { %4444 = sst [smem:[#allocation39_spill]] %s3882_s16  ;;  %s3024_s7 = smul.u32 48, %s3602_s29 }
  0x58   : > { %s2710_s28 = sshll.u32 %s553_s27, 6  ;;  %s4445_s3 = sld [smem:[#allocation44_spill]] }
  0x59   : > { %s576_s0 = scalar_lea.vmem [#allocation9], %s3023_s11  ;;  %s4392_s22 = scalar_lea.sflag [#allocation10], %s3803_s20 }
  0x5a   : > { %s584_s12 = sshll.u32 %s576_s0, 4  ;;  %p3893_p11 = pneg %p3875_p4  ;;  %s585_s12 = int_to_ptr.vmem [resolvable:$true] %s584_s12 }
  0x5b   : > { %s3319_s5 = scalar_lea.vmem %s585_s12, 48  ;;  %s3615_s27 = smov [#allocation9]  }
  0x5c   : > { %p3320_p13 = scmp.ne.s32.totalorder %s585_s12, %s3319_s5  ;;  %s3324_s21 = sshll.u32 %s3615_s27, 4  ;;  %s3325_s21 = int_to_ptr.vmem [resolvable:$false] %s3324_s21 }
  0x5d   : > { %s3326_s23 = scalar_lea.vmem %s3325_s21, 96  ;;  %p3327_p8 = scmp.lt.s32.totalorder %s585_s12, %s3325_s21 }
  0x5e   : > { %s582_s18 = scalar_lea.hbm %s4445_s3, %s3024_s7  ;;  %p3322_p10 = pnand %p3320_p13, %p3893_p11 }
  0x5f   : > { %p3328_p0 = scmp.lt.s32.totalorder %s3326_s23, %s3319_s5 }
  0x60   : > { %p3323_p5 = pneg %p3322_p10 }
  0x61   : > { %p3329_p1 = por %p3328_p0, %p3327_p8 }
  0x63   : > { %p3330_p7 = pnand %p3329_p1, %p3323_p5 }
  0x65   : > { %3333 = shalt.err (!%p3330_p7)
}
  0x66   : > { %3057 = dma.hbm_to_vmem [thread:$0]  (!%p3875_p4), %s582_s18, 48, %s585_s12, %s4392_s22  }
  0x67   : > { %s595_s24 = scalar_lea.vmem [#allocation11], %s2710_s28  ;;  %s661_s7 = scalar_lea.vmem [#allocation14], %s2710_s28 }
  0x68   : > { %s3903_s0 = sshll.u32 %s595_s24, 4  ;;  %s3905_s11 = sshll.u32 %s661_s7, 4  ;;  %s603_s0 = int_to_ptr.vmem [resolvable:$true] %s3903_s0 }
  0x69   : > { %4447 = sst [smem:[#allocation40_spill]] %s3905_s11  ;;  %s3908_s13 = sshll.u32 %s3602_s29, 10 }
  0x6a   : > { %s4448_s8 = sld [smem:[#allocation49_spill]]  ;;  %s634_s23 = scalar_lea.vmem [#allocation12], %s2710_s28 }
  0x6b   : > { %s641_s3 = sshll.u32 %s634_s23, 4  ;;  %s631_s16 = scalar_lea.sflag [#allocation13], %s3803_s20  ;;  %s642_s3 = int_to_ptr.vmem [resolvable:$true] %s641_s3 }
  0x6c   : > { %s3347_s26 = scalar_lea.vmem %s642_s3, 1024  ;;  %s3616_s12 = smov [#allocation12]  }
  0x6d   : > { %p3348_p7 = scmp.ne.s32.totalorder %s642_s3, %s3347_s26  ;;  %s3352_s18 = sshll.u32 %s3616_s12, 4  ;;  %s3353_s18 = int_to_ptr.vmem [resolvable:$false] %s3352_s18 }
  0x6e   : > { %s3354_s24 = scalar_lea.vmem %s3353_s18, 2048  ;;  %p3355_p5 = scmp.lt.s32.totalorder %s642_s3, %s3353_s18 }
  0x6f   : > { %p3350_p13 = pnand %p3348_p7, %p3893_p11  ;;  %p3356_p8 = scmp.lt.s32.totalorder %s3354_s24, %s3347_s26 }
  0x70   : > { %s640_s21 = scalar_lea.hbm %s4448_s8, %s3908_s13 }
  0x71   : > { %p3351_p10 = pneg %p3350_p13  ;;  %p3357_p0 = por %p3356_p8, %p3355_p5 }
  0x73   : > { %p3358_p1 = pnand %p3357_p0, %p3351_p10 }
  0x75   : > { %3361 = shalt.err (!%p3358_p1)
}
  0x76   : > { %s3617_s7 = smov 64   ;;  %s3618_s28 = smov 4  }
  0x77   : > { %3063 = dma.hbm_to_vmem [thread:$0]  (!%p3875_p4), %s640_s21, 1024, %s642_s3, %s631_s16, %s3617_s7, %s3617_s7, %s3618_s28  }
  0x78   : > { %s3019_s5 = smul.u32 24, %s3800_s19  ;;  %s4449_s18 = sld [smem:[#allocation41_spill]] }
  0x79   : > { %s2797_s26 = smul.u32 384, %s3606_s30  ;;  %s4450_s2 = sld [smem:[#allocation43_spill]] }
  0x7a   : > { %s3022_s27 = smul.u32 3072, %s3602_s29  ;;  %s513_s22 = scalar_lea.vmem [#allocation3], %s3019_s5 }
  0x7b   : > { %s520_s8 = sshll.u32 %s513_s22, 4  ;;  %s510_s10 = scalar_lea.sflag [#allocation4], %s3800_s19  ;;  %s521_s8 = int_to_ptr.vmem [resolvable:$true] %s520_s8 }
  0x7c   : > { %s3375_s11 = scalar_lea.vmem %s521_s8, 384  ;;  %p4451_p13 = pneg %p3807_p9 }
  0x7d   : > { %p3376_p7 = scmp.ne.s32.totalorder %s521_s8, %s3375_s11  ;;  %s3619_s3 = smov [#allocation3]  }
  0x7e   : > { %s519_s24 = scalar_lea.hbm %s4449_s18, %s2797_s26  ;;  %s3380_s21 = sshll.u32 %s3619_s3, 4  ;;  %s3381_s21 = int_to_ptr.vmem [resolvable:$false] %s3380_s21 }
  0x7f   : > { %s3933_s6 = scalar_lea.hbm %s4450_s2, %s3022_s27  ;;  %p3378_p10 = pnand %p3376_p7, %p4451_p13 }
  0x80   : > { %s3382_s23 = scalar_lea.vmem %s3381_s21, 768  ;;  %p3383_p8 = scmp.lt.s32.totalorder %s521_s8, %s3381_s21 }
  0x81   : > { %p3379_p5 = pneg %p3378_p10  ;;  %p3384_p0 = scmp.lt.s32.totalorder %s3382_s23, %s3375_s11 }
  0x83   : > { %p3385_p1 = por %p3384_p0, %p3383_p8 }
  0x85   : > { %p3386_p6 = pnand %p3385_p1, %p3379_p5 }
  0x87   : > { %3389 = shalt.err (!%p3386_p6)
}
  0x88   : > { %s3620_s22 = smov 128   ;;  %s3621_s25 = smov 8  }
  0x89   : > { %3048 = dma.hbm_to_vmem [thread:$0]  (!%p3807_p9), %s519_s24, 384, %s521_s8, %s510_s10, %s3620_s22, %s3620_s22, %s3621_s25  }
  0x8a   : > { %s3403_s19 = scalar_lea.vmem %s3884_s1, 3072  ;;  %s3622_s14 = smov [#allocation8]  }
  0x8b   : > { %p3404_p7 = scmp.ne.s32.totalorder %s3884_s1, %s3403_s19  ;;  %s3408_s5 = sshll.u32 %s3622_s14, 4  ;;  %s3409_s5 = int_to_ptr.vmem [resolvable:$false] %s3408_s5 }
  0x8c   : > { %s3410_s11 = scalar_lea.vmem %s3409_s5, 6144  ;;  %p3411_p5 = scmp.lt.s32.totalorder %s3884_s1, %s3409_s5 }
  0x8d   : > { %p3406_p13 = pnand %p3404_p7, %p3893_p11  ;;  %p3412_p6 = scmp.lt.s32.totalorder %s3410_s11, %s3403_s19 }
  0x8f   : > { %p3407_p10 = pneg %p3406_p13  ;;  %p3413_p8 = por %p3412_p6, %p3411_p5 }
  0x91   : > { %p3414_p0 = pnand %p3413_p8, %p3407_p10 }
  0x93   : > { %3417 = shalt.err (!%p3414_p0)
}
  0x94   : > { %s3623_s26 = smov 192   ;;  %s3624_s8 = smov 12  }
  0x95   : > { %s4452_s10 = scalar_lea.sflag [#allocation7], %s3803_s20  ;;  %s4453_s4 = sld [smem:[#allocation45_spill]] }
  0x96   : > { %3054 = dma.hbm_to_vmem [thread:$0]  (!%p3875_p4), %s3933_s6, 3072, %s3884_s1, %s4452_s10, %s3623_s26, %s3623_s26, %s3624_s8  }
  0x97   : > { %s3431_s18 = scalar_lea.vmem %s603_s0, 1024  ;;  %s3625_s24 = smov [#allocation11]  }
  0x98   : > { %p3432_p9 = scmp.ne.s32.totalorder %s603_s0, %s3431_s18  ;;  %s3436_s3 = sshll.u32 %s3625_s24, 4  ;;  %s3437_s3 = int_to_ptr.vmem [resolvable:$false] %s3436_s3 }
  0x99   : > { %s3438_s21 = scalar_lea.vmem %s3437_s3, 2048  ;;  %p3439_p13 = scmp.lt.s32.totalorder %s603_s0, %s3437_s3 }
  0x9a   : > { %p3434_p1 = pnand %p3432_p9, %p3893_p11  ;;  %p3440_p10 = scmp.lt.s32.totalorder %s3438_s21, %s3431_s18 }
  0x9b   : > { %s601_s12 = scalar_lea.hbm %s4453_s4, %s3908_s13 }
  0x9c   : > { %p3435_p7 = pneg %p3434_p1  ;;  %p3441_p5 = por %p3440_p10, %p3439_p13 }
  0x9e   : > { %p3442_p6 = pnand %p3441_p5, %p3435_p7 }
  0xa0   : > { %3445 = shalt.err (!%p3442_p6)
}
  0xa1   : > { %s4454_s1 = scalar_lea.sflag [#allocation10], %s3803_s20  ;;  %s4455_s6 = sld [smem:[#allocation40_spill]]  ;;  %s669_s6 = int_to_ptr.vmem [resolvable:$true] %s4455_s6 }
  0xa2   : > { %3060 = dma.hbm_to_vmem [thread:$0]  (!%p3875_p4), %s601_s12, 1024, %s603_s0, %s4454_s1, %s3617_s7, %s3617_s7, %s3618_s28  }
  0xa3   : > { %s4456_s25 = sld [smem:[#allocation51_spill]]  ;;  %s3459_s14 = scalar_lea.vmem %s669_s6, 1024 }
  0xa4   : > { %p3460_p8 = scmp.ne.s32.totalorder %s669_s6, %s3459_s14  ;;  %s3626_s5 = smov [#allocation14]  }
  0xa5   : > { %s3464_s11 = sshll.u32 %s3626_s5, 4  ;;  %s3465_s11 = int_to_ptr.vmem [resolvable:$false] %s3464_s11 }
  0xa6   : > { %p3462_p0 = pnand %p3460_p8, %p3893_p11  ;;  %s3466_s26 = scalar_lea.vmem %s3465_s11, 2048 }
  0xa7   : > { %p3467_p1 = scmp.lt.s32.totalorder %s669_s6, %s3465_s11  ;;  %p3468_p7 = scmp.lt.s32.totalorder %s3466_s26, %s3459_s14 }
  0xa8   : > { %p3463_p9 = pneg %p3462_p0 }
  0xa9   : > { %s667_s19 = scalar_lea.hbm %s4456_s25, %s3908_s13  ;;  %p3469_p13 = por %p3468_p7, %p3467_p1 }
  0xab   : > { %p3470_p10 = pnand %p3469_p13, %p3463_p9 }
  0xad   : > { %3473 = shalt.err (!%p3470_p10)
}
  0xae   : > { %3066 = dma.hbm_to_vmem [thread:$0]  (!%p3875_p4), %s667_s19, 1024, %s669_s6, %s631_s16, %s3617_s7, %s3617_s7, %s3618_s28  }
  0xaf   : > { %698 = sbr.rel (%p3830_p12) target bundleno = 2819 (0xb03), region = 84  ;;  %s4458_s0 = sld [smem:[#allocation25_spill]] (!%p3830_p12) }
  0xb5   : > { %s3983_s8 = sand.u32 1, %s4458_s0  }
  0xb6   : > { %s3025_s10 = smul.u32 24, %s3983_s8  ;;  %s701_s15 = scalar_lea.sflag [#allocation4], %s3983_s8 }
  0xb8   : > { %s3987_s27 = scalar_lea.vmem [#allocation3], %s3025_s10 }
  0xb9   : > { %3545 = dma.done.wait (%p3842_p3), %s701_s15, 384  }
  0xba   : > { %3547 = vsyncadd (%p3842_p3), %s701_s15, 4294966912  ;;  %s4460_s9 = sld [smem:[#allocation30_spill]]  ;;  %s4398_s16 = smul.u32 3, %s3983_s8 }
  0xbc   : > { %s3997_s28 = scalar_lea.vmem [#allocation6], %s4398_s16 }
  0xc0   : > { %s709_s20 = sand.u32 1, %s4460_s9  }
  0xc1   : > { %s710_s7 = scalar_lea.sflag [#allocation7], %s709_s20 }
  0xc2   : > { %3549 = dma.done.wait (%p3842_p3), %s710_s7, 48  }
  0xc3   : > { %3551 = vsyncadd (%p3842_p3), %s710_s7, 4294967248  ;;  %s4461_s12 = sld [smem:[#allocation22_spill]] }
  0xc9   : > { %s720_s24 = sand.u32 1, %s4461_s12  }
  0xca   : > { %s3027_s3 = smul.u32 192, %s720_s24 }
  0xcc   : > { %s4004_s21 = scalar_lea.vmem [#allocation8], %s3027_s3 }
  0xcd   : > { %3553 = dma.done.wait (%p3869_p2), %s710_s7, 3072  }
  0xce   : > { %3555 = vsyncadd (%p3869_p2), %s710_s7, 4294964224  ;;  %s3028_s1 = smul.u32 3, %s720_s24  ;;  %s728_s6 = scalar_lea.sflag [#allocation10], %s709_s20 }
  0xd0   : > { %s4010_s23 = scalar_lea.vmem [#allocation9], %s3028_s1 }
  0xd1   : > { %3557 = dma.done.wait (%p3869_p2), %s728_s6, 1072  }
  0xd2   : > { %3559 = vsyncadd (%p3869_p2), %s728_s6, 4294966224  ;;  %s2720_s22 = sshll.u32 %s720_s24, 6  ;;  %s746_s19 = scalar_lea.sflag [#allocation13], %s709_s20 }
  0xd3   : > { %s4016_s25 = scalar_lea.vmem [#allocation11], %s2720_s22  ;;  %s4018_s14 = scalar_lea.vmem [#allocation12], %s2720_s22 }
  0xd4   : > { %3561 = dma.done.wait (%p3869_p2), %s746_s19, 2048  }
  0xd5   : > { %3563 = vsyncadd (%p3869_p2), %s746_s19, 4294965248  ;;  %s4463_s5 = sld [smem:[#allocation27_spill]]  ;;  %v883_v0 = vlaneseq  ;;  %v3627_v2 = vmov 0.0   ;;  %s4066_s12 = scalar_lea.vmem [#allocation14], %s2720_s22 }
  0xd6   : > { %s4466_s18 = sld [smem:[#allocation48_spill]] }
  0xd7   : > { %v884_v1 = vand.u32 127, %v883_v0  ;;  %s4467_s6 = sld [smem:[#allocation50_spill]] }
  0xd8   : > { %s4468_s0 = sld [smem:[#allocation52_spill]] }
  0xd9   : > { %vm885_vm0 = vcmp.lt.s32.totalorder %v884_v1, 32  ;;  %vm889_vm1 = vcmp.lt.s32.totalorder %v884_v1, 16  ;;  %vm893_vm2 = vcmp.ge.s32.totalorder %v884_v1, 16  ;;  %s4469_s20 = sld [smem:[#allocation53_spill]] }
  0xda   : > { %v4038_v3 = vsel %vm885_vm0, 1.0, %v3627_v2  ;;  %v4041_v4 = vsel %vm889_vm1, 1.0, %v3627_v2  ;;  %vm894_vm3 = vmand %vm893_vm2, %vm885_vm0  ;;  %s4470_s4 = sld [smem:[#allocation54_spill]] }
  0xdb   : > { %p860_p12 = scmp.lt.s32.totalorder %s4463_s5, 1  ;;  %v4052_v5 = vsel %vm894_vm3, 1.0, %v3627_v2  ;;  %p2726_p3 = scmp.ne.s32.totalorder %s4463_s5, 0 }
  0xdd   : > { %s4027_s11 = scalar_select %p860_p12, %s4463_s5, 1 }
  0xde   : > { %s4473_s5 = sld [smem:[#allocation56_spill]] (!%p2726_p3) }
  0xdf   : > { %s868_s24 = scalar_lea.vmem %s4466_s18, %s4027_s11  ;;  %s871_s19 = scalar_lea.vmem %s4467_s6, %s4027_s11 }
  0xe0   : > { %s874_s10 = scalar_lea.vmem %s4468_s0, %s4027_s11  ;;  %s877_s13 = scalar_lea.vmem %s4469_s20, %s4027_s11 }
  0xe1   : > { %s880_s7 = scalar_lea.vmem %s4470_s4, %s4027_s11  ;;  %s4471_s18 = smul.u32 3, %s3983_s8 }
  0xe2   : > { %900 = sbr.rel (%p2726_p3) target bundleno = 546 (0x222), region = 116 }
  0xe3   : > { %s4070_s3 = scalar_lea.vmem [#allocation15], %s4471_s18 }
  0xe7   : > { %v901_v6 = vld [vmem:[%s3987_s27] sm:$0xff]  ;;  %v903_v7 = vld [vmem:[%s3987_s27 + $0x10] sm:$0xff]  ;;  %v902_v8 = vld [vmem:[%s3987_s27 + $0x8] sm:$0xff]  ;;  %s4472_s27 = sld [smem:[#allocation55_spill]] }
  0xe8   : > { %906 = vadd.xlane.f32.xlu0 %v901_v6  ;;  %910 = vadd.xlane.f32.xlu1 %v903_v7  ;;  %v2728_v36 = vld [vmem:[%s4473_s5] ss:$0 sm:$0xff] }
  0xec   : > { %908 = vadd.xlane.f32.xlu0 %v902_v8 }
  0xed   : > { %v2727_v34 = vld [vmem:[%s4472_s27] ss:$0 sm:$0xff] }
 0x171   : > { %v907_v9 = vpop.xlane.xlu0 %906  ;;  %v911_v10 = vpop.xlane.xlu1 %910 }
 0x172   : > { %v912_v11 = vmul.f32 0.03125, %v907_v9  ;;  %v914_v12 = vmul.f32 0.03125, %v911_v10 }
 0x174   : > { %v915_v13 = vsub.f32 %v901_v6, %v912_v11  ;;  %v917_v14 = vsub.f32 %v903_v7, %v914_v12 }
 0x175   : > { %v909_v15 = vpop.xlane.xlu0 %908 }
 0x176   : > { %v913_v16 = vmul.f32 0.03125, %v909_v15  ;;  %v918_v17 = vmul.f32 %v4038_v3, %v915_v13  ;;  %v920_v18 = vmul.f32 %v4038_v3, %v917_v14 }
 0x178   : > { %v916_v19 = vsub.f32 %v902_v8, %v913_v16  ;;  %v921_v20 = vmul.f32 %v918_v17, %v918_v17  ;;  %v923_v21 = vmul.f32 %v920_v18, %v920_v18 }
 0x17a   : > { %924 = vadd.xlane.f32.xlu1 %v921_v20  ;;  %v919_v22 = vmul.f32 %v4038_v3, %v916_v19 }
 0x17c   : > { %v922_v23 = vmul.f32 %v919_v22, %v919_v22 }
 0x17e   : > { %928 = vadd.xlane.f32.xlu1 %v923_v21  ;;  %926 = vadd.xlane.f32.xlu0 %v922_v23 }
 0x203   : > { %v925_v24 = vpop.xlane.xlu1 %924 }
 0x204   : > { %v930_v25 = vmul.f32 0.03125, %v925_v24 }
 0x206   : > { %v933_v26 = vadd.f32 1e-12, %v930_v25 }
 0x207   : > { %v929_v27 = vpop.xlane.xlu1 %928  ;;  %v927_v28 = vpop.xlane.xlu0 %926 }
 0x208   : > { %3174 = vrsqrt.f32 %v933_v26  ;;  %v932_v29 = vmul.f32 0.03125, %v929_v27  ;;  %v931_v30 = vmul.f32 0.03125, %v927_v28 }
 0x20a   : > { %v935_v31 = vadd.f32 1e-12, %v932_v29  ;;  %v934_v32 = vadd.f32 1e-12, %v931_v30 }
 0x20c   : > { %3176 = vrsqrt.f32 %v935_v31 }
 0x20d   : > { %3178 = vrsqrt.f32 %v934_v32 }
 0x215   : > { %v3175_v33 = vpop.eup %3174 }
 0x216   : > { %v939_v35 = vmul.f32 %v3175_v33, %v915_v13 }
 0x218   : > { %v948_v37 = vmul.f32 %v2727_v34, %v939_v35 }
 0x219   : > { %v3177_v38 = vpop.eup %3176 }
 0x21a   : > { %v3179_v39 = vpop.eup %3178  ;;  %v957_v40 = vadd.f32 %v2728_v36, %v948_v37  ;;  %v941_v41 = vmul.f32 %v3177_v38, %v917_v14 }
 0x21b   : > { %v940_v42 = vmul.f32 %v3179_v39, %v916_v19 }
 0x21c   : > { %960 = vst [vmem:[#allocation2 + $0x10] sm:$0xff] %v957_v40  ;;  %v950_v43 = vmul.f32 %v2727_v34, %v941_v41 }
 0x21d   : > { %v949_v44 = vmul.f32 %v2727_v34, %v940_v42 }
 0x21e   : > { %v959_v45 = vadd.f32 %v2728_v36, %v950_v43 }
 0x21f   : > { %v958_v46 = vadd.f32 %v2728_v36, %v949_v44 }
 0x220   : > { %962 = vst [vmem:[#allocation2 + $0x8] sm:$0xff] %v959_v45 }
 0x221   : > { %961 = vst [vmem:[#allocation2] sm:$0xff] %v958_v46 }
 0x222 PF: > { %v3180_v47 = vld [vmem:[%s4004_s21 + $0xac] ss:$12 sps:$4 sm:$0xff]   ;;  %v3182_v48 = vld [vmem:[%s4004_s21 + $0xa8] ss:$12 sps:$4 sm:$0xff]   ;;  %v3628_v49 = vmov 0   ;;  %vm3629_vm4 = vmmov 0  }
 0x223   : > { %1180 = vmatprep.mubr.bf16.mxu0 %v3628_v49  ;;  %1148 = vmatprep.subr.bf16.mxu0 %v3180_v47  ;;  %v3183_v50 = vld [vmem:[%s4004_s21 + $0x94] ss:$12 sps:$4 sm:$0xff]   ;;  %v3185_v51 = vld [vmem:[%s4004_s21 + $0x90] ss:$12 sps:$4 sm:$0xff]   ;;  %v3188_v53 = vld [vmem:[%s4004_s21 + $0x78] ss:$12 sps:$4 sm:$0xff]  }
 0x224   : > { %1149 = vmatpush1.bf16.msra.mxu0 %v3182_v48  ;;  %v3186_v52 = vld [vmem:[%s4004_s21 + $0x7c] ss:$12 sps:$4 sm:$0xff]   ;;  %v3189_v54 = vld [vmem:[%s4004_s21 + $0x64] ss:$12 sps:$4 sm:$0xff]   ;;  %v3191_v55 = vld [vmem:[%s4004_s21 + $0x60] ss:$12 sps:$4 sm:$0xff]  }
 0x225   : > { %1150 = vmatprep.subr.bf16.mxu0 %v3183_v50  ;;  %v4093_v56 = vld [vmem:[#allocation2 + $0x10] sm:$0xff]  ;;  %v3192_v57 = vld [vmem:[%s4004_s21 + $0x4c] ss:$12 sps:$4 sm:$0xff]   ;;  %v3204_v60 = vld [vmem:[%s4004_s21 + $0xb0] ss:$12 sps:$4 sm:$0xff]   ;;  %v1006_v18 = vshrl.u32 %v883_v0, 7 }
 0x226   : > { %v3205_v61 = vld [vmem:[%s4004_s21 + $0x98] ss:$12 sps:$4 sm:$0xff]   ;;  %2867 = vmatprep.subr.bf16.mxu1 %v3204_v60  ;;  %v3194_v62 = vld [vmem:[%s4004_s21 + $0x48] ss:$12 sps:$4 sm:$0xff]   ;;  %v3206_v1 = vld [vmem:[%s4004_s21 + $0x80] ss:$12 sps:$4 sm:$0xff]  }
 0x227   : > { %2868 = vmatpush3.bf16.msra.mxu1 %v3204_v60  ;;  %v3195_v63 = vld [vmem:[%s4004_s21 + $0x34] ss:$12 sps:$4 sm:$0xff]   ;;  %v3197_v6 = vld [vmem:[%s4004_s21 + $0x30] ss:$12 sps:$4 sm:$0xff]   ;;  %v3200_v9 = vld [vmem:[%s4004_s21 + $0x18] ss:$12 sps:$4 sm:$0xff]  }
 0x228   : > { %1151 = vmatpush1.bf16.msra.mxu0 %v3185_v51  ;;  %v4096_v58 = vld [vmem:[#allocation2] sm:$0xff]  ;;  %2869 = vmatprep.subr.bf16.mxu1 %v3205_v61  ;;  %v3198_v7 = vld [vmem:[%s4004_s21 + $0x1c] ss:$12 sps:$4 sm:$0xff]   ;;  %v3203_v12 = vld [vmem:[%s4004_s21] ss:$12 sps:$4 sm:$0xff]   ;;  %v1011_v19 = vsub.s32 1, %v1006_v18 }
 0x229   : > { %1152 = vmatprep.subr.bf16.mxu0 %v3186_v52  ;;  %v969_v59 = vpack.c.bf16 %v4096_v58, %v4093_v56  ;;  %v3207_v8 = vld [vmem:[%s4004_s21 + $0x68] ss:$12 sps:$4 sm:$0xff]   ;;  %v3201_v10 = vld [vmem:[%s4004_s21 + $0x4] ss:$12 sps:$4 sm:$0xff]   ;;  %v4113_v13 = vld [vmem:[#allocation2 + $0x8] sm:$0xff]  ;;  %v1007_v20 = vsub.s32 0, %v1006_v18 }
 0x22a   : > { %v3208_v11 = vld [vmem:[%s4004_s21 + $0x50] ss:$12 sps:$4 sm:$0xff]   ;;  %v970_v14 = vpack.c.bf16 %v4113_v13, %v4113_v13  ;;  %v3209_v15 = vld [vmem:[%s4004_s21 + $0x38] ss:$12 sps:$4 sm:$0xff]   ;;  %v3210_v16 = vld [vmem:[%s4004_s21 + $0x20] ss:$12 sps:$4 sm:$0xff]  }
 0x22b   : > { %2883 = vmatprep.mubr.bf16.mxu1 %v969_v59  ;;  %2870 = vmatpush3.bf16.msra.mxu1 %v3205_v61  ;;  %v3211_v17 = vld [vmem:[%s4004_s21 + $0x8] ss:$12 sps:$4 sm:$0xff]   ;;  %v1003_v21 = vld [vmem:[%s4010_s23] sm:$0x7]  ;;  %v1015_v52 = vsub.s32 2, %v1006_v18  ;;  %vm1620_vm5 = vcmask 1043456  }
 0x22c   : > { %1153 = vmatpush1.bf16.msra.mxu0 %v3188_v53  ;;  %2871 = vmatprep.subr.bf16.mxu1 %v3206_v1  ;;  %v1012_v22 = vrot.slane %v1003_v21, %v1011_v19  ;;  %v1008_v23 = vrot.slane %v1003_v21, %v1007_v20  ;;  %vm1400_vm6 = vcmask 64512   ;;  %s4474_s23 = sld [smem:[#allocation46_spill]] }
 0x22d   : > { %1154 = vmatprep.subr.bf16.mxu0 %v3189_v54  ;;  %v1016_v53 = vrot.slane %v1003_v21, %v1015_v52  ;;  %s4476_s1 = sld [smem:[#allocation47_spill]] }
 0x22f   : > { %2872 = vmatpush3.bf16.msra.mxu1 %v3206_v1 }
 0x230   : > { %1155 = vmatpush1.bf16.msra.mxu0 %v3191_v55  ;;  %2873 = vmatprep.subr.bf16.mxu1 %v3207_v8 }
 0x231   : > { %1156 = vmatprep.subr.bf16.mxu0 %v3192_v57 }
 0x233   : > { %2874 = vmatpush3.bf16.msra.mxu1 %v3207_v8  ;;  %s4477_s6 = scalar_lea.vmem %s4476_s1, %s4027_s11 }
 0x234   : > { %1157 = vmatpush1.bf16.msra.mxu0 %v3194_v62  ;;  %2875 = vmatprep.subr.bf16.mxu1 %v3208_v11 }
 0x235   : > { %1158 = vmatprep.subr.bf16.mxu0 %v3195_v63 }
 0x237   : > { %2876 = vmatpush3.bf16.msra.mxu1 %v3208_v11 }
 0x238   : > { %1159 = vmatpush1.bf16.msra.mxu0 %v3197_v6  ;;  %2877 = vmatprep.subr.bf16.mxu1 %v3209_v15 }
 0x239   : > { %1160 = vmatprep.subr.bf16.mxu0 %v3198_v7 }
 0x23b   : > { %2878 = vmatpush3.bf16.msra.mxu1 %v3209_v15 }
 0x23c   : > { %1161 = vmatpush1.bf16.msra.mxu0 %v3200_v9  ;;  %2879 = vmatprep.subr.bf16.mxu1 %v3210_v16 }
 0x23d   : > { %1162 = vmatprep.subr.bf16.mxu0 %v3201_v10 }
 0x23f   : > { %2880 = vmatpush3.bf16.msra.mxu1 %v3210_v16 }
 0x240   : > { %1163 = vmatpush1.bf16.msra.mxu0 %v3203_v12  ;;  %2881 = vmatprep.subr.bf16.mxu1 %v3211_v17 }
 0x241   : > { %2887 = vmatprep.subr.bf16.mxu0 %v3627_v2 }
 0x243   : > { %1181 = vmatmul.mubr.bf16.vlgmr.msra.gmra.mxu0 %v969_v59  ;;  %2882 = vmatpush3.bf16.msra.mxu1 %v3211_v17 }
 0x244   : > { %1190 = vmatprep.mubr.bf16.mxu0 %v3628_v49  ;;  %2899 = vmatprep.subr.bf16.mxu1 %v3627_v2 }
 0x246   : > { %2884 = vmatmul.mubr.bf16.vlgmr.msra.gmra.mxu1 %v970_v14 }
 0x247   : > { %2901 = vmatprep.mubr.msk.bf16.mxu1 %vm3629_vm4, %v3627_v2 }
 0x24b   : > { %1191 = vmatmul.mubr.bf16.gmra.mxu0 %v970_v14 }
 0x24c   : > { %2889 = vmatprep.mubr.msk.bf16.mxu0 %vm3629_vm4, %v3627_v2 }
 0x303   : > { %v1182_v24 = vpop.f32.mrf.mxu0 }
 0x304   : > { %v1183_v27 = vadd.f32 %v1182_v24, %v1008_v23 }
 0x305   : > { %v1184_v25 = vpop.f32.mrf.mxu0 }
 0x306   : > { %v1185_v26 = vadd.f32 %v1184_v25, %v1012_v22  ;;  %v1250_v31 = vmul.f32 %v4041_v4, %v1183_v27  ;;  %v1443_v46 = vmul.f32 %v4052_v5, %v1183_v27  ;;  %v2885_v54 = vpop.f32.mrf.mxu1 }
 0x307   : > { %v1186_v28 = vpop.f32.mrf.mxu0  ;;  %v1242_v55 = vadd.f32 %v2885_v54, %v1016_v53  ;;  %v2755_v54 = vld [vmem:[%s3997_s28 + $0x2] ss:$0 sm:$0xff] }
 0x308   : > { %v1247_v29 = vpack.c.bf16 %v1185_v26, %v1185_v26  ;;  %v1253_v35 = vpack.c.bf16 %v1250_v31, %v1250_v31  ;;  %v1187_v36 = vadd.f32 %v1186_v28, %v1008_v23  ;;  %v1446_v48 = vpack.c.bf16 %v1443_v46, %v1443_v46  ;;  %v1233_v57 = vpop.f32.mrf.mxu1 }
 0x309   : > { %v1188_v30 = vpop.f32.mrf.mxu0  ;;  %v1234_v59 = vadd.f32 %v1233_v57, %v1016_v53  ;;  %v1610_v62 = vmul.f32 %v4052_v5, %v1242_v55  ;;  %v1436_v6 = vmul.f32 %v4041_v4, %v1242_v55 }
 0x30a   : > { %2888 = vmatpush3.bf16.xpose.msra.mxu0 %v1247_v29  ;;  %v1189_v33 = vadd.f32 %v1188_v30, %v1012_v22  ;;  %v1251_v42 = vmul.f32 %v4041_v4, %v1187_v36  ;;  %v1444_v47 = vmul.f32 %v4052_v5, %v1187_v36  ;;  %v2886_v60 = vpop.f32.mrf.mxu1 }
 0x30b   : > { %v1192_v32 = vpop.f32.mrf.mxu0  ;;  %2893 = vmatprep.subr.bf16.mxu0 %v3627_v2  ;;  %v1608_v61 = vmul.f32 %v4052_v5, %v1234_v59  ;;  %v1434_v63 = vmul.f32 %v4041_v4, %v1234_v59  ;;  %v1613_v11 = vpack.c.bf16 %v1610_v62, %v1610_v62  ;;  %v1439_v14 = vpack.c.bf16 %v1436_v6, %v1436_v6 }
 0x30c   : > { %v1193_v37 = vadd.f32 %v1192_v32, %v1008_v23  ;;  %v1248_v39 = vpack.c.bf16 %v1189_v33, %v1189_v33  ;;  %v1254_v44 = vpack.c.bf16 %v1251_v42, %v1251_v42  ;;  %v1447_v49 = vpack.c.bf16 %v1444_v47, %v1444_v47  ;;  %v1236_v1 = vpop.f32.mrf.mxu1  ;;  %v2754_v42 = vld [vmem:[%s3997_s28 + $0x1] ss:$0 sm:$0xff] }
 0x30d   : > { %v1194_v0 = vpop.f32.mrf.mxu0  ;;  %v1237_v7 = vadd.f32 %v1236_v1, %v1016_v53  ;;  %v1611_v8 = vpack.c.bf16 %v1608_v61, %v1608_v61  ;;  %v1437_v12 = vpack.c.bf16 %v1434_v63, %v1434_v63  ;;  %v4157_v19 = vsel %vm1620_vm5, %v1613_v11, 0 }
 0x30e   : > { %v1195_v34 = vadd.f32 %v1194_v0, %v1012_v22  ;;  %v1252_v43 = vmul.f32 %v4041_v4, %v1193_v37  ;;  %v1445_v50 = vmul.f32 %v4052_v5, %v1193_v37 }
 0x30f   : > { %v1196_v38 = vpop.f32.mrf.mxu0  ;;  %v1435_v9 = vmul.f32 %v4041_v4, %v1237_v7  ;;  %v1609_v10 = vmul.f32 %v4052_v5, %v1237_v7  ;;  %v1622_v17 = vsel %vm1620_vm5, %v1611_v8, 0  ;;  %v4159_v20 = vsel %vm1620_vm5, %v1437_v12, 0 }
 0x310   : > { %v1249_v40 = vpack.c.bf16 %v1195_v34, %v1195_v34  ;;  %v1255_v45 = vpack.c.bf16 %v1252_v43, %v1252_v43  ;;  %v1448_v51 = vpack.c.bf16 %v1445_v50, %v1445_v50  ;;  %v4165_v4 = vsel %vm1620_vm5, %v1439_v14, 0  ;;  %v2753_v38 = vld [vmem:[%s3997_s28] ss:$0 sm:$0xff] }
 0x311   : > { %2890 = vmatmul.mubr.bf16.vlgmr.msra.gmra.mxu0 %v1253_v35  ;;  %v1197_v41 = vpop.f32.mrf.mxu0  ;;  %v1438_v15 = vpack.c.bf16 %v1435_v9, %v1435_v9  ;;  %v1612_v16 = vpack.c.bf16 %v1609_v10, %v1609_v10 }
 0x312   : > { %2894 = vmatpush3.bf16.xpose.msra.mxu0 %v1248_v39  ;;  %2900 = vmatpush3.bf16.xpose.msra.mxu1 %v1249_v40 }
 0x313   : > { %2895 = vmatprep.mubr.msk.bf16.mxu0 %vm3629_vm4, %v3627_v2  ;;  %2905 = vmatprep.subr.bf16.mxu0 %v3627_v2  ;;  %v1668_v18 = vsel %vm1620_vm5, %v1612_v16, 0  ;;  %v4161_v21 = vsel %vm1620_vm5, %v1438_v15, 0 }
 0x314   : > { %2911 = vmatprep.subr.bf16.mxu1 %v3627_v2 }
 0x319   : > { %2896 = vmatmul.mubr.bf16.vlgmr.msra.gmra.mxu0 %v1254_v44  ;;  %2902 = vmatmul.mubr.bf16.vlgmr.msra.gmra.mxu1 %v1255_v45 }
 0x31a   : > { %2906 = vmatpush3.bf16.xpose.msra.mxu0 %v1247_v29  ;;  %2912 = vmatpush3.bf16.xpose.msra.mxu1 %v1248_v39 }
 0x31b   : > { %2907 = vmatprep.mubr.msk.bf16.mxu0 %vm3629_vm4, %v3627_v2  ;;  %2913 = vmatprep.mubr.msk.bf16.mxu1 %vm3629_vm4, %v3627_v2 }
 0x31c   : > { %2917 = vmatprep.subr.bf16.mxu0 %v3627_v2  ;;  %2923 = vmatprep.subr.bf16.mxu1 %v3627_v2 }
 0x321   : > { %2908 = vmatmul.mubr.bf16.vlgmr.msra.gmra.mxu0 %v1446_v48  ;;  %2914 = vmatmul.mubr.bf16.vlgmr.msra.gmra.mxu1 %v1447_v49 }
 0x322   : > { %2918 = vmatpush3.bf16.xpose.msra.mxu0 %v1249_v40  ;;  %2919 = vmatprep.mubr.msk.bf16.mxu0 %vm3629_vm4, %v3627_v2 }
 0x323   : > { %2929 = vmatprep.subr.bf16.mxu0 %v3627_v2  ;;  %2925 = vmatprep.mubr.msk.bf16.mxu1 %vm3629_vm4, %v3627_v2 }
 0x324   : > { %2924 = vmatpush3.bf16.msra.mxu1 %v1622_v17 }
 0x325   : > { %2935 = vmatprep.subr.bf16.mxu1 %v3627_v2 }
 0x329   : > { %2920 = vmatmul.mubr.bf16.vlgmr.msra.gmra.mxu0 %v1448_v51 }
 0x32a   : > { %2931 = vmatprep.mubr.msk.bf16.mxu0 %vm3629_vm4, %v3627_v2  ;;  %2930 = vmatpush3.bf16.msra.mxu0 %v1668_v18 }
 0x32b   : > { %2941 = vmatprep.subr.bf16.mxu0 %v3627_v2 }
 0x3d1   : > { %v1290_v5 = vpop.f32.mrf.mxu0 }
 0x3d2   : > { %v1376_v49 = vmul.f32 0.25, %v1290_v5 }
 0x3d3   : > { %v2891_v22 = vpop.f32.mrf.mxu0 }
 0x3d4   : > { %v1397_v62 = vadd.f32 %v2753_v38, %v1376_v49 }
 0x3d5   : > { %v1293_v23 = vpop.f32.mrf.mxu0 }
 0x3d6   : > { %v1401_v1 = vsel %vm1400_vm6, %v1397_v62, -inf }
 0x3d7   : > { %v2892_v24 = vpop.f32.mrf.mxu0 }
 0x3d9   : > { %v1330_v25 = vpop.f32.mrf.mxu0  ;;  %v1370_v26 = vpop.f32.mrf.mxu1 }
 0x3da   : > { %v1377_v43 = vmul.f32 0.25, %v1330_v25  ;;  %v1378_v59 = vmul.f32 0.25, %v1370_v26 }
 0x3db   : > { %v2897_v27 = vpop.f32.mrf.mxu0  ;;  %v2903_v28 = vpop.f32.mrf.mxu1 }
 0x3dc   : > { %v1398_v52 = vadd.f32 %v2754_v42, %v1377_v43  ;;  %v1399_v6 = vadd.f32 %v2755_v54, %v1378_v59 }
 0x3dd   : > { %v1333_v29 = vpop.f32.mrf.mxu0  ;;  %v1373_v30 = vpop.f32.mrf.mxu1 }
 0x3de   : > { %v1404_v60 = vsel %vm1400_vm6, %v1398_v52, -inf  ;;  %v1407_v7 = vsel %vm1400_vm6, %v1399_v6, -inf }
 0x3df   : > { %v2898_v31 = vpop.f32.mrf.mxu0  ;;  %v2904_v32 = vpop.f32.mrf.mxu1 }
 0x3e1   : > { %v1483_v33 = vpop.f32.mrf.mxu0  ;;  %v1523_v0 = vpop.f32.mrf.mxu1 }
 0x3e2   : > { %v1569_v34 = vmul.f32 0.25, %v1483_v33  ;;  %v1570_v35 = vmul.f32 0.25, %v1523_v0 }
 0x3e3   : > { %v2909_v36 = vpop.f32.mrf.mxu0  ;;  %v2915_v37 = vpop.f32.mrf.mxu1 }
 0x3e4   : > { %v1572_v39 = vadd.f32 %v2753_v38, %v1569_v34  ;;  %v1573_v45 = vadd.f32 %v2754_v42, %v1570_v35 }
 0x3e5   : > { %v1486_v40 = vpop.f32.mrf.mxu0  ;;  %v1526_v41 = vpop.f32.mrf.mxu1 }
 0x3e6   : > { %v1575_v44 = vsel %vm1400_vm6, %v1572_v39, -inf  ;;  %v1578_v51 = vsel %vm1400_vm6, %v1573_v45, -inf }
 0x3e7   : > { %v2916_v46 = vpop.f32.mrf.mxu1  ;;  %1576 = vmax.xlane.f32.xlu0 %v1575_v44  ;;  %v2910_v47 = vpop.f32.mrf.mxu0 }
 0x3e9   : > { %v1563_v48 = vpop.f32.mrf.mxu0 }
 0x3ea   : > { %v1571_v50 = vmul.f32 0.25, %v1563_v48 }
 0x3eb   : > { %1579 = vmax.xlane.f32.xlu0 %v1578_v51  ;;  %v2921_v53 = vpop.f32.mrf.mxu0 }
 0x3ec   : > { %v1574_v55 = vadd.f32 %v2755_v54, %v1571_v50 }
 0x3ed   : > { %v1566_v57 = vpop.f32.mrf.mxu0 }
 0x3ee   : > { %v1581_v61 = vsel %vm1400_vm6, %v1574_v55, -inf }
 0x3ef   : > { %1405 = vmax.xlane.f32.xlu0 %v1404_v60  ;;  %1582 = vmax.xlane.f32.xlu1 %v1581_v61  ;;  %v2922_v63 = vpop.f32.mrf.mxu0 }
 0x3f3   : > { %1402 = vmax.xlane.f32.xlu1 %v1401_v1 }
 0x3f7   : > { %1408 = vmax.xlane.f32.xlu1 %v1407_v7  ;;  %v3217_v7 = vld [vmem:[%s4016_s25 + $0x10] sm:$0xff]  }
 0x470   : > { %v1577_v8 = vpop.xlane.xlu0 %1576 }
 0x471   : > { %v1584_v9 = vsub.f32 %v1572_v39, %v1577_v8  ;;  %v3218_v8 = vld [vmem:[%s4016_s25 + $0x8] sm:$0xff]  }
 0x473   : > { %v1587_v10 = vmul.f32 1.442695, %v1584_v9  ;;  %v3219_v9 = vld [vmem:[%s4016_s25] sm:$0xff]  }
 0x474   : > { %v1580_v11 = vpop.xlane.xlu0 %1579 }
 0x475   : > { %3236 = vpow2.f32 %v1587_v10  ;;  %v1585_v12 = vsub.f32 %v1573_v45, %v1580_v11 }
 0x477   : > { %v1589_v14 = vmul.f32 1.442695, %v1585_v12 }
 0x478   : > { %v1406_v15 = vpop.xlane.xlu0 %1405  ;;  %v1583_v16 = vpop.xlane.xlu1 %1582 }
 0x479   : > { %3238 = vpow2.f32 %v1589_v14  ;;  %v1411_v17 = vsub.f32 %v1398_v52, %v1406_v15  ;;  %v1586_v18 = vsub.f32 %v1574_v55, %v1583_v16 }
 0x47b   : > { %v1591_v5 = vmul.f32 1.442695, %v1586_v18  ;;  %v1415_v22 = vmul.f32 1.442695, %v1411_v17 }
 0x47c   : > { %v1403_v23 = vpop.xlane.xlu1 %1402 }
 0x47d   : > { %v1410_v24 = vsub.f32 %v1397_v62, %v1403_v23  ;;  %3240 = vpow2.f32 %v1591_v5 }
 0x47e   : > { %3242 = vpow2.f32 %v1415_v22 }
 0x47f   : > { %v1413_v25 = vmul.f32 1.442695, %v1410_v24 }
 0x480   : > { %v1409_v26 = vpop.xlane.xlu1 %1408 }
 0x481   : > { %3244 = vpow2.f32 %v1413_v25  ;;  %v1412_v27 = vsub.f32 %v1399_v6, %v1409_v26  ;;  %v3214_v6 = vld [vmem:[%s4016_s25 + $0x28] sm:$0xff]  }
 0x482   : > { %v3237_v28 = vpop.eup %3236 }
 0x483   : > { %v1417_v29 = vmul.f32 1.442695, %v1412_v27  ;;  %v1593_v30 = vsel %vm1400_vm6, %v3237_v28, 0.0 }
 0x484   : > { %1594 = vadd.xlane.f32.xlu0 %v1593_v30 }
 0x485   : > { %3246 = vpow2.f32 %v1417_v29 }
 0x486   : > { %v3239_v31 = vpop.eup %3238 }
 0x487   : > { %v1596_v32 = vsel %vm1400_vm6, %v3239_v31, 0.0 }
 0x488   : > { %1597 = vadd.xlane.f32.xlu1 %v1596_v32 }
 0x48a   : > { %v3241_v33 = vpop.eup %3240 }
 0x48b   : > { %v1599_v0 = vsel %vm1400_vm6, %v3241_v33, 0.0  ;;  %v3243_v34 = vpop.eup %3242 }
 0x48c   : > { %1600 = vadd.xlane.f32.xlu0 %v1599_v0  ;;  %v1422_v37 = vsel %vm1400_vm6, %v3243_v34, 0.0 }
 0x48e   : > { %v3245_v35 = vpop.eup %3244 }
 0x48f   : > { %v1419_v36 = vsel %vm1400_vm6, %v3245_v35, 0.0 }
 0x490   : > { %1420 = vadd.xlane.f32.xlu1 %v1419_v36  ;;  %1423 = vadd.xlane.f32.xlu0 %v1422_v37 }
 0x492   : > { %v3247_v38 = vpop.eup %3246 }
 0x493   : > { %v1425_v39 = vsel %vm1400_vm6, %v3247_v38, 0.0 }
 0x494   : > { %1426 = vadd.xlane.f32.xlu1 %v1425_v39 }
 0x50d   : > { %v1595_v40 = vpop.xlane.xlu0 %1594 }
 0x50e   : > { %3248 = vrcp.f32 %v1595_v40 }
 0x511   : > { %v1598_v41 = vpop.xlane.xlu1 %1597 }
 0x512   : > { %3250 = vrcp.f32 %v1598_v41 }
 0x515   : > { %v1601_v42 = vpop.xlane.xlu0 %1600 }
 0x516   : > { %3252 = vrcp.f32 %v1601_v42 }
 0x519   : > { %v1421_v43 = vpop.xlane.xlu1 %1420  ;;  %v1424_v44 = vpop.xlane.xlu0 %1423 }
 0x51a   : > { %3254 = vrcp.f32 %v1421_v43 }
 0x51b   : > { %v3249_v45 = vpop.eup %3248  ;;  %3256 = vrcp.f32 %v1424_v44 }
 0x51c   : > { %v1605_v46 = vmul.f32 %v3249_v45, %v3237_v28 }
 0x51d   : > { %v1427_v47 = vpop.xlane.xlu1 %1426 }
 0x51e   : > { %3258 = vrcp.f32 %v1427_v47  ;;  %v1614_v48 = vpack.c.bf16 %v1605_v46, %v1605_v46 }
 0x51f   : > { %v3251_v49 = vpop.eup %3250 }
 0x520   : > { %2926 = vmatmul.mubr.msk.bf16.vlgmr.msra.gmra.mxu1 %vm1400_vm6, %v1614_v48  ;;  %v1606_v50 = vmul.f32 %v3251_v49, %v3239_v31 }
 0x521   : > { %2936 = vmatpush3.bf16.msra.mxu1 %v4157_v19  ;;  %2937 = vmatprep.mubr.msk.bf16.mxu1 %vm3629_vm4, %v3627_v2  ;;  %v3212_v19 = vld [vmem:[%s4016_s25 + $0x38] sm:$0xff]  }
 0x522   : > { %v1615_v51 = vpack.c.bf16 %v1606_v50, %v1606_v50  ;;  %2947 = vmatprep.subr.bf16.mxu1 %v3627_v2 }
 0x523   : > { %v3253_v52 = vpop.eup %3252 }
 0x524   : > { %2932 = vmatmul.mubr.msk.bf16.vlgmr.msra.gmra.mxu0 %vm1400_vm6, %v1615_v51  ;;  %v1607_v53 = vmul.f32 %v3253_v52, %v3241_v33  ;;  %v3220_v52 = vld [vmem:[%s4018_s14 + $0x38] sm:$0xff]  }
 0x525   : > { %2942 = vmatpush3.bf16.msra.mxu0 %v4159_v20  ;;  %2943 = vmatprep.mubr.msk.bf16.mxu0 %vm3629_vm4, %v3627_v2 }
 0x526   : > { %2953 = vmatprep.subr.bf16.mxu0 %v3627_v2  ;;  %v1616_v55 = vpack.c.bf16 %v1607_v53, %v1607_v53 }
 0x527   : > { %v3255_v54 = vpop.eup %3254 }
 0x528   : > { %v3257_v57 = vpop.eup %3256  ;;  %v1431_v59 = vmul.f32 %v3255_v54, %v3245_v35  ;;  %2938 = vmatmul.mubr.msk.bf16.vlgmr.msra.gmra.mxu1 %vm1400_vm6, %v1616_v55 }
 0x529   : > { %2948 = vmatpush3.bf16.msra.mxu1 %v4161_v21  ;;  %2949 = vmatprep.mubr.msk.bf16.mxu1 %vm3629_vm4, %v3627_v2  ;;  %v1432_v61 = vmul.f32 %v3257_v57, %v3243_v34  ;;  %v3213_v21 = vld [vmem:[%s4016_s25 + $0x30] sm:$0xff]  }
 0x52a   : > { %v1440_v60 = vpack.c.bf16 %v1431_v59, %v1431_v59  ;;  %2959 = vmatprep.subr.bf16.mxu1 %v3212_v19 }
 0x52b   : > { %v3259_v20 = vpop.eup %3258  ;;  %v1441_v63 = vpack.c.bf16 %v1432_v61, %v1432_v61 }
 0x52c   : > { %2944 = vmatmul.mubr.msk.bf16.vlgmr.msra.gmra.mxu0 %vm1400_vm6, %v1440_v60  ;;  %v1433_v62 = vmul.f32 %v3259_v20, %v3247_v38 }
 0x52d   : > { %2954 = vmatpush3.bf16.msra.mxu0 %v4165_v4  ;;  %2955 = vmatprep.mubr.msk.bf16.mxu0 %vm3629_vm4, %v3627_v2  ;;  %v3215_v4 = vld [vmem:[%s4016_s25 + $0x20] sm:$0xff]   ;;  %v3216_v2 = vld [vmem:[%s4016_s25 + $0x18] sm:$0xff]   ;;  %s4475_s25 = scalar_lea.vmem %s4474_s23, %s4027_s11 }
 0x52e   : > { %v1442_v1 = vpack.c.bf16 %v1433_v62, %v1433_v62  ;;  %v2762_v42 = vld [vmem:[%s4475_s25] ss:$0 sm:$0xff]  ;;  %2979 = vmatprep.subr.bf16.mxu0 %v3220_v52 }
 0x530   : > { %2950 = vmatmul.mubr.msk.bf16.vlgmr.msra.gmra.mxu1 %vm1400_vm6, %v1441_v63 }
 0x531   : > { %2960 = vmatpush3.bf16.msra.mxu1 %v3212_v19 }
 0x532   : > { %2961 = vmatprep.subr.bf16.mxu1 %v3213_v21 }
 0x534   : > { %2956 = vmatmul.mubr.msk.bf16.vlgmr.msra.gmra.mxu0 %vm1400_vm6, %v1442_v1  ;;  %v3221_v1 = vld [vmem:[%s4018_s14 + $0x30] sm:$0xff]  }
 0x535   : > { %2962 = vmatpush3.bf16.msra.mxu1 %v3213_v21  ;;  %2980 = vmatpush3.bf16.msra.mxu0 %v3220_v52 }
 0x536   : > { %2963 = vmatprep.subr.bf16.mxu1 %v3214_v6  ;;  %2981 = vmatprep.subr.bf16.mxu0 %v3221_v1 }
 0x539   : > { %2964 = vmatpush3.bf16.msra.mxu1 %v3214_v6  ;;  %2982 = vmatpush3.bf16.msra.mxu0 %v3221_v1  ;;  %v3222_v6 = vld [vmem:[%s4018_s14 + $0x28] sm:$0xff]  }
 0x53a   : > { %2965 = vmatprep.subr.bf16.mxu1 %v3215_v4  ;;  %2983 = vmatprep.subr.bf16.mxu0 %v3222_v6 }
 0x53d   : > { %2966 = vmatpush3.bf16.msra.mxu1 %v3215_v4  ;;  %v3223_v4 = vld [vmem:[%s4018_s14 + $0x20] sm:$0xff]   ;;  %2984 = vmatpush3.bf16.msra.mxu0 %v3222_v6 }
 0x53e   : > { %2967 = vmatprep.subr.bf16.mxu1 %v3216_v2  ;;  %2985 = vmatprep.subr.bf16.mxu0 %v3223_v4 }
 0x541   : > { %2968 = vmatpush3.bf16.msra.mxu1 %v3216_v2  ;;  %v3224_v2 = vld [vmem:[%s4018_s14 + $0x18] sm:$0xff]   ;;  %2986 = vmatpush3.bf16.msra.mxu0 %v3223_v4 }
 0x542   : > { %2969 = vmatprep.subr.bf16.mxu1 %v3217_v7  ;;  %2987 = vmatprep.subr.bf16.mxu0 %v3224_v2 }
 0x545   : > { %2970 = vmatpush3.bf16.msra.mxu1 %v3217_v7  ;;  %v3225_v7 = vld [vmem:[%s4018_s14 + $0x10] sm:$0xff]   ;;  %2988 = vmatpush3.bf16.msra.mxu0 %v3224_v2 }
 0x546   : > { %2971 = vmatprep.subr.bf16.mxu1 %v3218_v8  ;;  %2989 = vmatprep.subr.bf16.mxu0 %v3225_v7 }
 0x549   : > { %2972 = vmatpush3.bf16.msra.mxu1 %v3218_v8  ;;  %v3226_v8 = vld [vmem:[%s4018_s14 + $0x8] sm:$0xff]   ;;  %2990 = vmatpush3.bf16.msra.mxu0 %v3225_v7 }
 0x54a   : > { %2973 = vmatprep.subr.bf16.mxu1 %v3219_v9  ;;  %2991 = vmatprep.subr.bf16.mxu0 %v3226_v8 }
 0x54d   : > { %2974 = vmatpush3.bf16.msra.mxu1 %v3219_v9  ;;  %v3227_v9 = vld [vmem:[%s4018_s14] sm:$0xff]   ;;  %2992 = vmatpush3.bf16.msra.mxu0 %v3226_v8 }
 0x54e   : > { %2993 = vmatprep.subr.bf16.mxu0 %v3227_v9 }
 0x551   : > { %2994 = vmatpush3.bf16.msra.mxu0 %v3227_v9 }
 0x5e0   : > { %v1658_v10 = vpop.f32.mrf.mxu1 }
 0x5e2   : > { %v2927_v11 = vpop.f32.mrf.mxu1 }
 0x5e4   : > { %v1661_v12 = vpop.f32.mrf.mxu1  ;;  %v1704_v14 = vpop.f32.mrf.mxu0 }
 0x5e6   : > { %v2928_v15 = vpop.f32.mrf.mxu1  ;;  %v2933_v16 = vpop.f32.mrf.mxu0 }
 0x5e8   : > { %v1707_v17 = vpop.f32.mrf.mxu0  ;;  %v1750_v18 = vpop.f32.mrf.mxu1 }
 0x5ea   : > { %v2934_v5 = vpop.f32.mrf.mxu0  ;;  %v2939_v22 = vpop.f32.mrf.mxu1 }
 0x5ec   : > { %v1796_v23 = vpop.f32.mrf.mxu0  ;;  %v1753_v24 = vpop.f32.mrf.mxu1 }
 0x5ed   : > { %v1797_v29 = vadd.f32 %v1796_v23, %v1658_v10  ;;  %v2771_v24 = vld [vmem:[%s4477_s6] ss:$0 sm:$0xff] }
 0x5ee   : > { %v2945_v25 = vpop.f32.mrf.mxu0  ;;  %v2940_v26 = vpop.f32.mrf.mxu1 }
 0x5f0   : > { %v1799_v27 = vpop.f32.mrf.mxu0  ;;  %v1842_v28 = vpop.f32.mrf.mxu1 }
 0x5f1   : > { %v1843_v30 = vadd.f32 %v1842_v28, %v1704_v14 }
 0x5f2   : > { %v2946_v31 = vpop.f32.mrf.mxu0  ;;  %v2951_v32 = vpop.f32.mrf.mxu1 }
 0x5f3   : > { %v1894_v33 = vpack.c.bf16 %v1843_v30, %v1797_v29  ;;  %v2772_v30 = vld [vmem:[%s868_s24] ss:$0 sm:$0xff] }
 0x5f4   : > { %v1888_v0 = vpop.f32.mrf.mxu0  ;;  %v1845_v34 = vpop.f32.mrf.mxu1 }
 0x5f5   : > { %v1889_v35 = vadd.f32 %v1888_v0, %v1750_v18  ;;  %2975 = vmatprep.mubr.bf16.mxu1 %v1894_v33 }
 0x5f6   : > { %v2957_v36 = vpop.f32.mrf.mxu0  ;;  %v2952_v38 = vpop.f32.mrf.mxu1 }
 0x5f7   : > { %v1895_v37 = vpack.c.bf16 %v1889_v35, %v1889_v35  ;;  %v3229_v38 = vld [vmem:[%s4066_s12 + $0x30] sm:$0xff]  }
 0x5f8   : > { %v1891_v39 = vpop.f32.mrf.mxu0 }
 0x5f9   : > { %2976 = vmatmul.mubr.bf16.vlgmr.msra.gmra.mxu1 %v1895_v37  ;;  %v3228_v37 = vld [vmem:[%s4066_s12 + $0x38] sm:$0xff]   ;;  %v3230_v39 = vld [vmem:[%s4066_s12 + $0x28] sm:$0xff]  }
 0x5fa   : > { %v2958_v40 = vpop.f32.mrf.mxu0  ;;  %2999 = vmatprep.subr.bf16.mxu1 %v3228_v37 }
 0x5fb   : > { %3000 = vmatpush3.bf16.msra.mxu1 %v3228_v37  ;;  %v3231_v40 = vld [vmem:[%s4066_s12 + $0x20] sm:$0xff]  }
 0x5fc   : > { %3001 = vmatprep.subr.bf16.mxu1 %v3229_v38 }
 0x5ff   : > { %3002 = vmatpush3.bf16.msra.mxu1 %v3229_v38 }
 0x600   : > { %3003 = vmatprep.subr.bf16.mxu1 %v3230_v39 }
 0x603   : > { %3004 = vmatpush3.bf16.msra.mxu1 %v3230_v39 }
 0x604   : > { %3005 = vmatprep.subr.bf16.mxu1 %v3231_v40 }
 0x607   : > { %3006 = vmatpush3.bf16.msra.mxu1 %v3231_v40 }
 0x6b9   : > { %v2977_v41 = vpop.f32.mrf.mxu1 }
 0x6ba   : > { %v2010_v46 = vadd.f32 %v2977_v41, %v2762_v42  ;;  %v3232_v41 = vld [vmem:[%s4066_s12 + $0x18] sm:$0xff]  }
 0x6bb   : > { %v2001_v43 = vpop.f32.mrf.mxu1  ;;  %3007 = vmatprep.subr.bf16.mxu1 %v3232_v41 }
 0x6bc   : > { %v2002_v44 = vadd.f32 %v2762_v42, %v2001_v43  ;;  %v2017_v51 = vadd.f32 %v2010_v46, %v4113_v13  ;;  %3008 = vmatpush3.bf16.msra.mxu1 %v3232_v41  ;;  %v3234_v43 = vld [vmem:[%s4066_s12 + $0x8] sm:$0xff]  }
 0x6bd   : > { %v2978_v45 = vpop.f32.mrf.mxu1 }
 0x6be   : > { %v2015_v47 = vadd.f32 %v2002_v44, %v4093_v56  ;;  %v3235_v44 = vld [vmem:[%s4066_s12] sm:$0xff]   ;;  %v2773_v45 = vld [vmem:[%s871_s19] ss:$0 sm:$0xff] }
 0x6bf   : > { %v2004_v48 = vpop.f32.mrf.mxu1 }
 0x6c0   : > { %v2005_v49 = vadd.f32 %v2762_v42, %v2004_v48  ;;  %2020 = vadd.xlane.f32.xlu0 %v2015_v47  ;;  %v3233_v42 = vld [vmem:[%s4066_s12 + $0x10] sm:$0xff]  }
 0x6c1   : > { %3009 = vmatprep.subr.bf16.mxu1 %v3233_v42 }
 0x6c2   : > { %v2016_v50 = vadd.f32 %v2005_v49, %v4096_v58  ;;  %3010 = vmatpush3.bf16.msra.mxu1 %v3233_v42 }
 0x6c3   : > { %3011 = vmatprep.subr.bf16.mxu1 %v3234_v43 }
 0x6c4   : > { %2022 = vadd.xlane.f32.xlu1 %v2016_v50  ;;  %2024 = vadd.xlane.f32.xlu0 %v2017_v51 }
 0x6c6   : > { %3012 = vmatpush3.bf16.msra.mxu1 %v3234_v43 }
 0x6c7   : > { %3013 = vmatprep.subr.bf16.mxu1 %v3235_v44 }
 0x6ca   : > { %3014 = vmatpush3.bf16.msra.mxu1 %v3235_v44 }
 0x749   : > { %v2021_v53 = vpop.xlane.xlu0 %2020 }
 0x74a   : > { %v2026_v54 = vmul.f32 0.03125, %v2021_v53 }
 0x74c   : > { %v2029_v55 = vsub.f32 %v2015_v47, %v2026_v54 }
 0x74d   : > { %v2023_v19 = vpop.xlane.xlu1 %2022  ;;  %v2025_v57 = vpop.xlane.xlu0 %2024 }
 0x74e   : > { %v2027_v59 = vmul.f32 0.03125, %v2023_v19  ;;  %v2028_v56 = vmul.f32 0.03125, %v2025_v57  ;;  %v2032_v60 = vmul.f32 %v4038_v3, %v2029_v55 }
 0x750   : > { %v2030_v58 = vsub.f32 %v2016_v50, %v2027_v59  ;;  %v2031_v20 = vsub.f32 %v2017_v51, %v2028_v56  ;;  %v2035_v13 = vmul.f32 %v2032_v60, %v2032_v60 }
 0x752   : > { %2038 = vadd.xlane.f32.xlu1 %v2035_v13  ;;  %v2033_v61 = vmul.f32 %v4038_v3, %v2030_v58  ;;  %v2034_v62 = vmul.f32 %v4038_v3, %v2031_v20 }
 0x754   : > { %v2036_v63 = vmul.f32 %v2033_v61, %v2033_v61  ;;  %v2037_v21 = vmul.f32 %v2034_v62, %v2034_v62 }
 0x756   : > { %2040 = vadd.xlane.f32.xlu0 %v2036_v63  ;;  %2042 = vadd.xlane.f32.xlu1 %v2037_v21 }
 0x7db   : > { %v2039_v10 = vpop.xlane.xlu1 %2038 }
 0x7dc   : > { %v2044_v11 = vmul.f32 0.03125, %v2039_v10 }
 0x7de   : > { %v2047_v12 = vadd.f32 1e-12, %v2044_v11 }
 0x7df   : > { %v2043_v14 = vpop.xlane.xlu1 %2042  ;;  %v2041_v15 = vpop.xlane.xlu0 %2040 }
 0x7e0   : > { %3260 = vrsqrt.f32 %v2047_v12  ;;  %v2046_v16 = vmul.f32 0.03125, %v2043_v14  ;;  %v2045_v17 = vmul.f32 0.03125, %v2041_v15 }
 0x7e2   : > { %v2049_v18 = vadd.f32 1e-12, %v2046_v16  ;;  %v2048_v5 = vadd.f32 1e-12, %v2045_v17 }
 0x7e4   : > { %3262 = vrsqrt.f32 %v2049_v18 }
 0x7e5   : > { %3264 = vrsqrt.f32 %v2048_v5  ;;  %v2782_v5 = vld [vmem:[%s874_s10] ss:$0 sm:$0xff] }
 0x7ed   : > { %v3261_v22 = vpop.eup %3260 }
 0x7ee   : > { %v2053_v23 = vmul.f32 %v3261_v22, %v2029_v55 }
 0x7f0   : > { %v2062_v29 = vmul.f32 %v2771_v24, %v2053_v23 }
 0x7f1   : > { %v3263_v25 = vpop.eup %3262 }
 0x7f2   : > { %v3265_v26 = vpop.eup %3264  ;;  %v2055_v27 = vmul.f32 %v3263_v25, %v2031_v20  ;;  %v4241_v0 = vadd.f32 %v2772_v30, %v2062_v29 }
 0x7f3   : > { %v2054_v28 = vmul.f32 %v3265_v26, %v2030_v58 }
 0x7f4   : > { %v2064_v31 = vmul.f32 %v2771_v24, %v2055_v27 }
 0x7f5   : > { %v2063_v32 = vmul.f32 %v2771_v24, %v2054_v28 }
 0x7f6   : > { %v4239_v33 = vadd.f32 %v2772_v30, %v2064_v31 }
 0x7f7   : > { %v4243_v34 = vadd.f32 %v2772_v30, %v2063_v32 }
 0x7f8   : > { %v2075_v35 = vpack.c.bf16 %v4239_v33, %v4239_v33 }
 0x7f9   : > { %v2074_v36 = vpack.c.bf16 %v4243_v34, %v4241_v0 }
 0x7fb   : > { %2995 = vmatprep.mubr.bf16.mxu0 %v2074_v36 }
 0x7fc   : > { %2996 = vmatmul.mubr.bf16.vlgmr.msra.gmra.mxu0 %v2075_v35 }
 0x8bc   : > { %v2997_v46 = vpop.f32.mrf.mxu0 }
 0x8bd   : > { %v2190_v47 = vadd.f32 %v2997_v46, %v2773_v45 }
 0x8be   : > { %v2181_v48 = vpop.f32.mrf.mxu0 }
 0x8bf   : > { %v2200_v49 = vmul.f32 0.044715, %v2190_v47  ;;  %v2182_v50 = vadd.f32 %v2773_v45, %v2181_v48  ;;  %v2197_v8 = vmul.f32 0.5, %v2190_v47 }
 0x8c0   : > { %v2998_v51 = vpop.f32.mrf.mxu0 }
 0x8c1   : > { %v2203_v52 = vmul.f32 %v2200_v49, %v2190_v47  ;;  %v2198_v53 = vmul.f32 0.044715, %v2182_v50  ;;  %v2195_v9 = vmul.f32 0.5, %v2182_v50 }
 0x8c2   : > { %v2184_v54 = vpop.f32.mrf.mxu0 }
 0x8c3   : > { %v2206_v55 = vmul.f32 %v2203_v52, %v2190_v47  ;;  %v2201_v19 = vmul.f32 %v2198_v53, %v2182_v50  ;;  %v2185_v57 = vadd.f32 %v2773_v45, %v2184_v54 }
 0x8c5   : > { %v2209_v59 = vadd.f32 %v2206_v55, %v2190_v47  ;;  %v2204_v56 = vmul.f32 %v2201_v19, %v2182_v50  ;;  %v2199_v60 = vmul.f32 0.044715, %v2185_v57  ;;  %v2196_v10 = vmul.f32 0.5, %v2185_v57  ;;  %v2792_v19 = vld [vmem:[%s880_s7] ss:$0 sm:$0xff] }
 0x8c7   : > { %v2212_v58 = vmul.f32 0.7978846, %v2209_v59  ;;  %v2202_v20 = vmul.f32 %v2199_v60, %v2185_v57  ;;  %v2207_v13 = vadd.f32 %v2204_v56, %v2182_v50 }
 0x8c9   : > { %v2205_v61 = vmul.f32 %v2202_v20, %v2185_v57  ;;  %v2210_v62 = vmul.f32 0.7978846, %v2207_v13  ;;  %3266 = vtanh.f32 %v2212_v58 }
 0x8cb   : > { %v2208_v63 = vadd.f32 %v2205_v61, %v2185_v57  ;;  %3268 = vtanh.f32 %v2210_v62 }
 0x8cd   : > { %v2211_v21 = vmul.f32 0.7978846, %v2208_v63 }
 0x8cf   : > { %3270 = vtanh.f32 %v2211_v21 }
 0x8d6   : > { %v3267_v1 = vpop.eup %3266 }
 0x8d7   : > { %v2218_v4 = vadd.f32 1.0, %v3267_v1 }
 0x8d8   : > { %v3269_v6 = vpop.eup %3268 }
 0x8d9   : > { %v2216_v2 = vadd.f32 1.0, %v3269_v6  ;;  %v2221_v12 = vmul.f32 %v2218_v4, %v2197_v8 }
 0x8db   : > { %v2219_v14 = vmul.f32 %v2216_v2, %v2195_v9  ;;  %v2223_v17 = vpack.c.bf16 %v2221_v12, %v2221_v12 }
 0x8dc   : > { %v3271_v7 = vpop.eup %3270 }
 0x8dd   : > { %v2217_v11 = vadd.f32 1.0, %v3271_v7 }
 0x8df   : > { %v2220_v15 = vmul.f32 %v2217_v11, %v2196_v10 }
 0x8e1   : > { %v2222_v16 = vpack.c.bf16 %v2220_v15, %v2219_v14 }
 0x8e3   : > { %3015 = vmatprep.mubr.bf16.mxu1 %v2222_v16 }
 0x8e4   : > { %3016 = vmatmul.mubr.bf16.vlgmr.msra.gmra.mxu1 %v2223_v17 }
 0x9a4   : > { %v3017_v18 = vpop.f32.mrf.mxu1 }
 0x9a5   : > { %v2338_v25 = vadd.f32 %v3017_v18, %v2782_v5 }
 0x9a6   : > { %v2329_v22 = vpop.f32.mrf.mxu1 }
 0x9a7   : > { %v2330_v23 = vadd.f32 %v2782_v5, %v2329_v22  ;;  %v2345_v30 = vadd.f32 %v2338_v25, %v4239_v33 }
 0x9a8   : > { %v3018_v24 = vpop.f32.mrf.mxu1 }
 0x9a9   : > { %v2343_v26 = vadd.f32 %v2330_v23, %v4241_v0 }
 0x9aa   : > { %v2332_v27 = vpop.f32.mrf.mxu1 }
 0x9ab   : > { %v2333_v28 = vadd.f32 %v2782_v5, %v2332_v27  ;;  %2348 = vadd.xlane.f32.xlu0 %v2343_v26 }
 0x9ad   : > { %v2344_v29 = vadd.f32 %v2333_v28, %v4243_v34 }
 0x9af   : > { %2350 = vadd.xlane.f32.xlu1 %v2344_v29  ;;  %2352 = vadd.xlane.f32.xlu0 %v2345_v30 }
 0xa34   : > { %v2349_v31 = vpop.xlane.xlu0 %2348 }
 0xa35   : > { %v2354_v32 = vmul.f32 0.03125, %v2349_v31 }
 0xa37   : > { %v2357_v35 = vsub.f32 %v2343_v26, %v2354_v32 }
 0xa38   : > { %v2351_v36 = vpop.xlane.xlu1 %2350  ;;  %v2353_v37 = vpop.xlane.xlu0 %2352 }
 0xa39   : > { %v2355_v38 = vmul.f32 0.03125, %v2351_v36  ;;  %v2356_v39 = vmul.f32 0.03125, %v2353_v37  ;;  %v2360_v40 = vmul.f32 %v4038_v3, %v2357_v35 }
 0xa3b   : > { %v2358_v41 = vsub.f32 %v2344_v29, %v2355_v38  ;;  %v2359_v0 = vsub.f32 %v2345_v30, %v2356_v39  ;;  %v2363_v42 = vmul.f32 %v2360_v40, %v2360_v40 }
 0xa3d   : > { %2366 = vadd.xlane.f32.xlu1 %v2363_v42  ;;  %v2361_v43 = vmul.f32 %v4038_v3, %v2358_v41  ;;  %v2362_v34 = vmul.f32 %v4038_v3, %v2359_v0  ;;  %v2791_v3 = vld [vmem:[%s877_s13] ss:$0 sm:$0xff]  ;;  %s4483_s13 = sld [smem:[#allocation27_spill]] }
 0xa3f   : > { %v2364_v33 = vmul.f32 %v2361_v43, %v2361_v43  ;;  %v2365_v44 = vmul.f32 %v2362_v34, %v2362_v34 }
 0xa41   : > { %2368 = vadd.xlane.f32.xlu0 %v2364_v33  ;;  %2370 = vadd.xlane.f32.xlu1 %v2365_v44 }
 0xa43   : > { %p2793_p2 = scmp.ne.s32.totalorder %s4483_s13, 1 }
 0xac6   : > { %v2367_v45 = vpop.xlane.xlu1 %2366 }
 0xac7   : > { %v2372_v46 = vmul.f32 0.03125, %v2367_v45 }
 0xac9   : > { %v2375_v47 = vadd.f32 1e-12, %v2372_v46 }
 0xaca   : > { %v2371_v48 = vpop.xlane.xlu1 %2370  ;;  %v2369_v49 = vpop.xlane.xlu0 %2368 }
 0xacb   : > { %3272 = vrsqrt.f32 %v2375_v47  ;;  %v2374_v50 = vmul.f32 0.03125, %v2371_v48  ;;  %v2373_v51 = vmul.f32 0.03125, %v2369_v49 }
 0xacd   : > { %v2377_v52 = vadd.f32 1e-12, %v2374_v50  ;;  %v2376_v53 = vadd.f32 1e-12, %v2373_v51 }
 0xacf   : > { %3274 = vrsqrt.f32 %v2377_v52 }
 0xad0   : > { %3276 = vrsqrt.f32 %v2376_v53 }
 0xad8   : > { %v3273_v54 = vpop.eup %3272 }
 0xad9   : > { %v2381_v55 = vmul.f32 %v3273_v54, %v2357_v35 }
 0xadb   : > { %v2390_v57 = vmul.f32 %v2791_v3, %v2381_v55 }
 0xadc   : > { %v3275_v59 = vpop.eup %3274 }
 0xadd   : > { %v3277_v56 = vpop.eup %3276  ;;  %v2399_v60 = vadd.f32 %v2792_v19, %v2390_v57  ;;  %v2383_v58 = vmul.f32 %v3275_v59, %v2359_v0 }
 0xade   : > { %v2382_v20 = vmul.f32 %v3277_v56, %v2358_v41 }
 0xadf   : > { %2402 = vst [vmem:[#allocation2 + $0x10] sm:$0xff] %v2399_v60  ;;  %v2392_v13 = vmul.f32 %v2791_v3, %v2383_v58 }
 0xae0   : > { %v2391_v61 = vmul.f32 %v2791_v3, %v2382_v20  ;;  %2408 = sbr.rel (%p2793_p2) target bundleno = 2791 (0xae7), region = 120 }
 0xae1   : > { %v2401_v62 = vadd.f32 %v2792_v19, %v2392_v13 }
 0xae2   : > { %v2400_v63 = vadd.f32 %v2792_v19, %v2391_v61 }
 0xae3   : > { %2404 = vst [vmem:[#allocation2 + $0x8] sm:$0xff] %v2401_v62 }
 0xae4   : > { %2403 = vst [vmem:[#allocation2] sm:$0xff] %v2400_v63 }
 0xae5   : > { %2409 = vst [vmem:[%s4070_s3] sm:$0x1] %v2399_v60  ;;  %2410 = vst [vmem:[%s4070_s3 + $0x1] sm:$0x1] %v2400_v63 }
 0xae6   : > { %2411 = vst [vmem:[%s4070_s3 + $0x2] sm:$0x1] %v2401_v62 }
 0xae7 PF: > { %s4484_s11 = sld [smem:[#allocation28_spill]]  ;;  %s2426_s28 = sshll.u32 %s4070_s3, 4  ;;  %s4294_s28 = int_to_ptr.vmem [resolvable:$true] %s2426_s28 }
 0xae8   : > { %s4485_s7 = sld [smem:[#allocation31_spill]]  ;;  %s2413_s1 = scalar_lea.sflag [#allocation5], %s3983_s8 }
 0xae9   : > { %s4486_s25 = sld [smem:[#allocation57_spill]]  ;;  %s3474_s6 = scalar_lea.vmem %s4294_s28, 48 }
 0xaea   : > { %p3475_p4 = scmp.ne.s32.totalorder %s4294_s28, %s3474_s6  ;;  %s3630_s26 = smov [#allocation15]  }
 0xaeb   : > { %s3478_s17 = sshll.u32 %s3630_s26, 4  ;;  %s3479_s17 = int_to_ptr.vmem [resolvable:$false] %s3478_s17 }
 0xaec   : > { %s3480_s3 = scalar_lea.vmem %s3479_s17, 96  ;;  %p3481_p8 = scmp.lt.s32.totalorder %s4294_s28, %s3479_s17 }
 0xaed   : > { %s2802_s5 = smul.u32 48, %s4484_s11  ;;  %p3482_p0 = scmp.lt.s32.totalorder %s3480_s3, %s3474_s6 }
 0xaee   : > { %p4488_p11 = scmp.ne.s32.totalorder %s4485_s7, 0 }
 0xaef   : > { %s4487_s14 = smov %s4486_s25  ;;  %s4292_s20 = scalar_lea.hbm %s4486_s25, %s2802_s5 }
 0xaf0   : > { %p3476_p5 = pnand %p3475_p4, %p4488_p11  ;;  %p3483_p9 = por %p3482_p0, %p3481_p8 }
 0xaf2   : > { %p3477_p6 = pneg %p3476_p5 }
 0xaf4   : > { %p3484_p1 = pnand %p3483_p9, %p3477_p6 }
 0xaf6   : > { %3487 = shalt.err (!%p3484_p1)
}
 0xaf7   : > { %s3488_s0 = scalar_lea.hbm %s4292_s20, 48  ;;  %s3492_s9 = scalar_lea.hbm %s4487_s14, 96 }
 0xaf8   : > { %p3489_p7 = scmp.ne.s32.totalorder %s4292_s20, %s3488_s0  ;;  %p3493_p12 = scmp.lt.s32.totalorder %s4292_s20, %s4487_s14 }
 0xaf9   : > { %p3494_p3 = scmp.lt.s32.totalorder %s3492_s9, %s3488_s0 }
 0xafa   : > { %p3490_p13 = pnand %p3489_p7, %p4488_p11 }
 0xafb   : > { %p3495_p2 = por %p3494_p3, %p3493_p12 }
 0xafc   : > { %p3491_p10 = pneg %p3490_p13 }
 0xafe   : > { %p3496_p4 = pnand %p3495_p2, %p3491_p10 }
 0xb00   : > { %3499 = shalt.err (!%p3496_p4)
}
 0xb01   : > { %s3631_s18 = smov 16   ;;  %s3632_s10 = smov 1  }
 0xb02   : > { %3043 = dma.vmem_to_hbm [thread:$0]  (%p4488_p11), %s4294_s28, 48, %s4292_s20, %s2413_s1, %s3631_s18, %s3631_s18, %s3632_s10  }
 0xb03 PF: > { %s4489_s2 = sld [smem:[#allocation29_spill]] }
 0xb04   : > { %s4490_s4 = sld [smem:[#allocation24_spill]] }
 0xb05   : > { %s4491_s27 = sld [smem:[#allocation32_spill]] }
 0xb09   : > { %p3072_p5 = scmp.ge.s32.totalorder %s4489_s2, 2 }
 0xb0a   : > { %s2441_s16 = sand.u32 1, %s4490_s4  }
 0xb0b   : > { %p4492_p6 = scmp.ne.s32.totalorder %s4491_s27, 0  ;;  %s2442_s22 = scalar_lea.sflag [#allocation5], %s2441_s16 }
 0xb0d   : > { %p3068_p8 = pnand %p3072_p5, %p4492_p6 }
 0xb0f   : > { %p3069_p0 = pneg %p3068_p8 }
 0xb11   : > { %3565 = dma.done.wait (%p3069_p0), %s2442_s22, 48  }
 0xb12   : > { %3567 = vsyncadd (%p3069_p0), %s2442_s22, 4294967248  ;;  %s41_s0 = sadd.s32 1, %s4489_s2   ;;  %s4493_s21 = sld [smem:[#allocation22_spill]] }
 0xb13   : > { %p38_p9 = scmp.ge.s32.totalorder %s41_s0, 6   ;;  %s4494_s22 = sld [smem:[#allocation23_spill]] }
 0xb14   : > { %s4495_s23 = sld [smem:[#allocation37_spill]]  ;;  %s4501_s27 = smov %s3602_s29 }
 0xb15   : > { %s4496_s24 = sld [smem:[#allocation25_spill]]  ;;  %s4502_s28 = smov %s3606_s30 }
 0xb16   : > { %s4497_s25 = sld [smem:[#allocation26_spill]] }
 0xb17   : > { %s4498_s26 = sld [smem:[#allocation39_spill]] }
 0xb18   : > { %s4499_s8 = sld [smem:[#allocation35_spill]] }
 0xb19   : > { %s4500_s13 = sld [smem:[#allocation36_spill]] }
 0xb1b   :  { %40 = sbr.rel (!%p38_p9) target bundleno = 33 (0x21), region = 230 }
 0xb1e   : > { %s4503_s29 = smov %s4499_s8 }
 0xb1f   : > { %s4504_s30 = smov %s4500_s13 }
 0xb20   :  { %2447 = vsyncpa [#allocation4], 1 }
 0xb21   :  { %2449 = vsyncpa [#allocation4 + $0x1], 1 }
 0xb22   :  { %2450 = vsyncpa [#allocation7], 1 }
 0xb23   :  { %2452 = vsyncpa [#allocation7 + $0x1], 1 }
 0xb24   :  { %2453 = vsyncpa [#allocation10], 1 }
 0xb25   :  { %2455 = vsyncpa [#allocation10 + $0x1], 1 }
 0xb26   :  { %2456 = vsyncpa [#allocation13], 1 }
 0xb27   :  { %2458 = vsyncpa [#allocation13 + $0x1], 1 }
 0xb28   :  { %2459 = vsyncpa [#allocation5], 1 }
 0xb29   :  { %2461 = vsyncpa [#allocation5 + $0x1], 1 }

</bundles_post_ra>
